<compile_context>
chip_gen: v7x
topology: tpu7x:2x2x1
jax: 0.10.0
libtpu: 0.0.40
codegen_flags: <defaults>
</compile_context>

<pallas_src>
import math

import numpy as np

import jax
import jax.numpy as jnp
from jax import lax
from jax.experimental import pallas as pl
from jax.experimental.pallas import tpu as pltpu

D_MODEL = 32
NHEAD = 8
DIM_FF = 64
EPS = 1e-5
NEG = -1e30  # additive mask value for cross-batch attention entries


# ------------------------------- fused Pallas kernel -------------------------------

def _make_fused_kernel(S, B, E, H, FF):
    Dh = E // H
    SB = S * B

    def _layer_norm(y, g, b):
        mean = jnp.mean(y, axis=-1, keepdims=True)
        c = y - mean
        var = jnp.mean(c * c, axis=-1, keepdims=True)
        return c * lax.rsqrt(var + EPS) * g + b

    def kernel(x_ref, w_ref, c_ref, bias_ref, o_ref):
        x = x_ref[...]                                            # (SB, E); token i = s*B + b

        # ---- packed 1-row parameters (single (8,128) slab, static slices) ----
        in_b = c_ref[0:1, :3 * E]
        out_b = c_ref[1:2, :E]
        b1 = c_ref[2:3, :FF]
        b2 = c_ref[3:4, :E]
        ln1_g = c_ref[4:5, :E]
        ln1_b = c_ref[5:6, :E]
        ln2_g = c_ref[6:7, :E]
        ln2_b = c_ref[7:8, :E]

        # ---- packed weights (E, 3E | E | FF | FF), static window loads ----
        in_w = w_ref[:, :3 * E]                                   # (E, 3E)  q-scale pre-folded
        w1 = w_ref[:, 4 * E:4 * E + FF]                           # (E, FF)
        w2 = w_ref[:, 4 * E + FF:4 * E + 2 * FF]                  # (E, FF)  PyTorch linear2.weight

        # ---- self-attention: QKV projection (q pre-scaled by 1/sqrt(Dh)) ----
        qkv = (jnp.dot(x, in_w, preferred_element_type=jnp.float32)
               + in_b)                                            # (SB, 3E)

        # Pre-baked additive bias: 0 for same-batch pairs, -1e30 otherwise.
        bias = bias_ref[...]                                      # (SB, SB)

        attn = None
        for h in range(H):                                        # unrolled (H is tiny)
            qh = qkv[:, h * Dh:(h + 1) * Dh]                      # (SB, Dh)
            kh = qkv[:, E + h * Dh:E + (h + 1) * Dh]
            vh = qkv[:, 2 * E + h * Dh:2 * E + (h + 1) * Dh]
            # contract last axes directly -- no explicit kh.T relayout
            s = lax.dot_general(qh, kh, (((1,), (1,)), ((), ())),
                                preferred_element_type=jnp.float32)   # (SB, SB)
            s = s + bias
            m = jnp.max(s, axis=-1, keepdims=True)
            p = jnp.exp(s - m)
            p = p / jnp.sum(p, axis=-1, keepdims=True)            # exact softmax
            ctx = jnp.dot(p, vh, preferred_element_type=jnp.float32)  # (SB, Dh)
            # project this head's context through its slice of the out-proj
            # weights and accumulate -- no lane concatenate needed.
            out_w_h = w_ref[h * Dh:(h + 1) * Dh, 3 * E:4 * E]     # (Dh, E)
            term = jnp.dot(ctx, out_w_h, preferred_element_type=jnp.float32)
            attn = term if attn is None else attn + term
        attn_out = attn + out_b                                   # (SB, E)

        # ---- add & norm 1 (dropout1 = identity in eval) ----
        y = _layer_norm(x + attn_out, ln1_g, ln1_b)

        # ---- feed-forward (dropout = identity in eval) ----
        h1 = jnp.maximum(
            jnp.dot(y, w1, preferred_element_type=jnp.float32) + b1, 0.0)     # (SB, FF)
        ff = lax.dot_general(h1, w2, (((1,), (1,)), ((), ())),
                             preferred_element_type=jnp.float32) + b2         # (SB, E)

        # ---- add & norm 2 (dropout2 = identity in eval) ----
        o_ref[...] = _layer_norm(y + ff, ln2_g, ln2_b)

    return kernel


def _batch_bias(S, B):
    """Trace-time constant additive mask: 0 for same-batch token pairs, -1e30 else."""
    batch = np.arange(S * B) % B
    valid = batch[:, None] == batch[None, :]
    return jnp.asarray(np.where(valid, 0.0, NEG), dtype=jnp.float32)


def adaptive_layer_pallas(src, kp, nhead=NHEAD):
    S, B, E = src.shape
    SB = S * B
    FF = kp["dim_ff"]
    x = src.reshape(SB, E)   # leading-dim merge only; no relayout

    kernel = _make_fused_kernel(S, B, E, nhead, FF)
    bias = _batch_bias(S, B)

    vmem = lambda: pl.BlockSpec(memory_space=pltpu.MemorySpace.VMEM)
    out = pl.pallas_call(
        kernel,
        out_shape=jax.ShapeDtypeStruct((SB, E), jnp.float32),
        in_specs=[vmem(), vmem(), vmem(), vmem()],
        out_specs=vmem(),
    )(x, kp["w_slab"], kp["c_slab"], bias)
    return out.reshape(S, B, E)


# ------------------------------- parameters -------------------------------

def init_params(key, d_model=D_MODEL, dim_ff=DIM_FF):
    ks = jax.random.split(key, 8)
    sc = 0.05
    p = {
        # PyTorch layouts: Linear weight is (out, in)
        "in_w": jax.random.normal(ks[0], (3 * d_model, d_model), jnp.float32) * sc,
        "in_b": jax.random.normal(ks[1], (3 * d_model,), jnp.float32) * sc,
        "out_w": jax.random.normal(ks[2], (d_model, d_model), jnp.float32) * sc,
        "out_b": jax.random.normal(ks[3], (d_model,), jnp.float32) * sc,
        "w1": jax.random.normal(ks[4], (dim_ff, d_model), jnp.float32) * sc,
        "b1": jax.random.normal(ks[5], (dim_ff,), jnp.float32) * sc,
        "w2": jax.random.normal(ks[6], (d_model, dim_ff), jnp.float32) * sc,
        "b2": jax.random.normal(ks[7], (d_model,), jnp.float32) * sc,
        "ln1_g": jnp.ones((d_model,), jnp.float32),
        "ln1_b": jnp.zeros((d_model,), jnp.float32),
        "ln2_g": jnp.full((d_model,), 1.1, jnp.float32),
        "ln2_b": jnp.full((d_model,), 0.05, jnp.float32),
    }
    return p


def kernel_params(p, d_model=D_MODEL, nhead=NHEAD, dim_ff=DIM_FF):
    """Pack parameters for the fused kernel (done once, outside the hot path).

    * 1/sqrt(head_dim) q-scale is folded into the query slice of the
      in-projection weight AND bias.
    * All four weight matrices are concatenated along lanes into one
      (E, 3E+E+FF+FF) slab:  [in_w.T | out_w.T | w1.T | w2].
    * The nine 1-row vectors are packed into a single (8, 128) slab
      (one vreg), one vector per row.
    """
    E, FF = d_model, dim_ff
    Dh = E // nhead
    scale = 1.0 / math.sqrt(Dh)
    in_w = p["in_w"].at[:E].multiply(scale)
    in_b = p["in_b"].at[:E].multiply(scale)

    w_slab = jnp.concatenate(
        [in_w.T, p["out_w"].T, p["w1"].T, p["w2"]], axis=1
    ).astype(jnp.float32)                                         # (E, 4E + 2FF)

    lane = max(128, 3 * E, FF)
    c = jnp.zeros((8, lane), jnp.float32)
    c = c.at[0, :3 * E].set(in_b)
    c = c.at[1, :E].set(p["out_b"])
    c = c.at[2, :FF].set(p["b1"])
    c = c.at[3, :E].set(p["b2"])
    c = c.at[4, :E].set(p["ln1_g"])
    c = c.at[5, :E].set(p["ln1_b"])
    c = c.at[6, :E].set(p["ln2_g"])
    c = c.at[7, :E].set(p["ln2_b"])

    return {"w_slab": w_slab, "c_slab": c, "dim_ff": FF}


# ------------------------------- pure-JAX reference -------------------------------

def _layer_norm_ref(x, g, b):
    mean = jnp.mean(x, axis=-1, keepdims=True)
    c = x - mean
    var = jnp.mean(c * c, axis=-1, keepdims=True)
    return c * lax.rsqrt(var + EPS) * g + b


def adaptive_layer_ref(src, p):
    S, B, E = src.shape
    H = NHEAD
    Dh = E // H
    x = src.reshape(S * B, E)
    qkv = x @ p["in_w"].T + p["in_b"]
    q, k, v = jnp.split(qkv, 3, axis=-1)
    q = q * (1.0 / math.sqrt(Dh))

    def to_heads(t):
        return t.reshape(S, B, H, Dh).transpose(1, 2, 0, 3).reshape(B * H, S, Dh)

    qh, kh, vh = to_heads(q), to_heads(k), to_heads(v)
    s = jnp.einsum("bqd,bkd->bqk", qh, kh)
    a = jax.nn.softmax(s, axis=-1)
    oh = jnp.einsum("bqk,bkd->bqd", a, vh)
    o = oh.reshape(B, H, S, Dh).transpose(2, 0, 1, 3).reshape(S * B, E)
    attn_out = o @ p["out_w"].T + p["out_b"]
    y = _layer_norm_ref(x + attn_out, p["ln1_g"], p["ln1_b"])
    ff = jnp.maximum(y @ p["w1"].T + p["b1"], 0.0) @ p["w2"].T + p["b2"]
    z = _layer_norm_ref(y + ff, p["ln2_g"], p["ln2_b"])
    return z.reshape(S, B, E)


# ------------------------------- main -------------------------------

if __name__ == "__main__":
    key = jax.random.PRNGKey(0)
    k_src, k_param = jax.random.split(key)

    S, B, E = 8, 2, D_MODEL
    src = jax.random.normal(k_src, (S, B, E), jnp.float32)

    params = init_params(k_param)
    kp = kernel_params(params)

    out = adaptive_layer_pallas(src, kp)
    out = jax.block_until_ready(out)

    ref = jax.block_until_ready(adaptive_layer_ref(src, params))
    assert out.shape == (S, B, E)
    assert jnp.allclose(out, ref, atol=1e-4, rtol=1e-4), (
        f"max abs err {float(jnp.max(jnp.abs(out - ref)))}"
    )

    print("KERNEL_OK")
</pallas_src>

<mosaic_0001>
module attributes {stable_mosaic.version = 11 : i64} {
  func.func @kernel(%arg0: memref<16x32xf32, #tpu.memory_space<vmem>>, %arg1: memref<32x256xf32, #tpu.memory_space<vmem>>, %arg2: memref<8x128xf32, #tpu.memory_space<vmem>>, %arg3: memref<16x16xf32, #tpu.memory_space<vmem>>, %arg4: memref<16x32xf32, #tpu.memory_space<vmem>>) attributes {dimension_semantics = [], scalar_prefetch = 0 : i64, scratch_operands = 0 : i64, tpu.core_type = #tpu.core_type<tc>} {
    %c0 = arith.constant 0 : index
    %c0_0 = arith.constant 0 : index
    %0 = vector.load %arg0[%c0, %c0_0] : memref<16x32xf32, #tpu.memory_space<vmem>>, vector<16x32xf32>
    %c0_1 = arith.constant 0 : index
    %c0_2 = arith.constant 0 : index
    %1 = vector.load %arg2[%c0_1, %c0_2] : memref<8x128xf32, #tpu.memory_space<vmem>>, vector<1x96xf32>
    %c1 = arith.constant 1 : index
    %c0_3 = arith.constant 0 : index
    %2 = vector.load %arg2[%c1, %c0_3] : memref<8x128xf32, #tpu.memory_space<vmem>>, vector<1x32xf32>
    %c2 = arith.constant 2 : index
    %c0_4 = arith.constant 0 : index
    %3 = vector.load %arg2[%c2, %c0_4] : memref<8x128xf32, #tpu.memory_space<vmem>>, vector<1x64xf32>
    %c3 = arith.constant 3 : index
    %c0_5 = arith.constant 0 : index
    %4 = vector.load %arg2[%c3, %c0_5] : memref<8x128xf32, #tpu.memory_space<vmem>>, vector<1x32xf32>
    %c4 = arith.constant 4 : index
    %c0_6 = arith.constant 0 : index
    %5 = vector.load %arg2[%c4, %c0_6] : memref<8x128xf32, #tpu.memory_space<vmem>>, vector<1x32xf32>
    %c5 = arith.constant 5 : index
    %c0_7 = arith.constant 0 : index
    %6 = vector.load %arg2[%c5, %c0_7] : memref<8x128xf32, #tpu.memory_space<vmem>>, vector<1x32xf32>
    %c6 = arith.constant 6 : index
    %c0_8 = arith.constant 0 : index
    %7 = vector.load %arg2[%c6, %c0_8] : memref<8x128xf32, #tpu.memory_space<vmem>>, vector<1x32xf32>
    %c7 = arith.constant 7 : index
    %c0_9 = arith.constant 0 : index
    %8 = vector.load %arg2[%c7, %c0_9] : memref<8x128xf32, #tpu.memory_space<vmem>>, vector<1x32xf32>
    %c0_10 = arith.constant 0 : index
    %c0_11 = arith.constant 0 : index
    %9 = vector.load %arg1[%c0_10, %c0_11] : memref<32x256xf32, #tpu.memory_space<vmem>>, vector<32x96xf32>
    %c0_12 = arith.constant 0 : index
    %c128 = arith.constant 128 : index
    %10 = vector.load %arg1[%c0_12, %c128] : memref<32x256xf32, #tpu.memory_space<vmem>>, vector<32x64xf32>
    %c0_13 = arith.constant 0 : index
    %c192 = arith.constant 192 : index
    %11 = vector.load %arg1[%c0_13, %c192] : memref<32x256xf32, #tpu.memory_space<vmem>>, vector<32x64xf32>
    %cst = arith.constant dense<0.000000e+00> : vector<16x96xf32>
    %12 = tpu.matmul %0, %9, %cst {dimension_numbers = #tpu.dot_dimension_numbers<[1], [0], [0], [1], [0, 0, 1, 1], [], []>} : vector<16x32xf32>, vector<32x96xf32>, vector<16x96xf32> -> vector<16x96xf32>
    %13 = vector.broadcast %1 : vector<1x96xf32> to vector<16x96xf32>
    %14 = arith.addf %12, %13 : vector<16x96xf32>
    %c0_14 = arith.constant 0 : index
    %c0_15 = arith.constant 0 : index
    %15 = vector.load %arg3[%c0_14, %c0_15] : memref<16x16xf32, #tpu.memory_space<vmem>>, vector<16x16xf32>
    %16 = vector.extract_strided_slice %14 {offsets = [0, 0], sizes = [16, 4], strides = [1, 1]} : vector<16x96xf32> to vector<16x4xf32>
    %17 = vector.extract_strided_slice %14 {offsets = [0, 32], sizes = [16, 4], strides = [1, 1]} : vector<16x96xf32> to vector<16x4xf32>
    %18 = vector.extract_strided_slice %14 {offsets = [0, 64], sizes = [16, 4], strides = [1, 1]} : vector<16x96xf32> to vector<16x4xf32>
    %cst_16 = arith.constant dense<0.000000e+00> : vector<16x16xf32>
    %19 = tpu.matmul %16, %17, %cst_16 {dimension_numbers = #tpu.dot_dimension_numbers<[1], [1], [0], [0], [0, 0, 1, 0], [], []>} : vector<16x4xf32>, vector<16x4xf32>, vector<16x16xf32> -> vector<16x16xf32>
    %20 = arith.addf %19, %15 : vector<16x16xf32>
    %cst_17 = arith.constant dense<0xFF800000> : vector<16xf32>
    %21 = vector.multi_reduction <maximumf>, %20, %cst_17 [1] : vector<16x16xf32> to vector<16xf32>
    %22 = vector.shape_cast %21 : vector<16xf32> to vector<16x1xf32>
    %23 = vector.broadcast %22 : vector<16x1xf32> to vector<16x16xf32>
    %24 = arith.subf %20, %23 : vector<16x16xf32>
    %25 = math.exp %24 : vector<16x16xf32>
    %cst_18 = arith.constant dense<0.000000e+00> : vector<16xf32>
    %26 = vector.multi_reduction <add>, %25, %cst_18 [1] : vector<16x16xf32> to vector<16xf32>
    %27 = vector.shape_cast %26 : vector<16xf32> to vector<16x1xf32>
    %28 = vector.broadcast %27 : vector<16x1xf32> to vector<16x16xf32>
    %29 = arith.divf %25, %28 : vector<16x16xf32>
    %cst_19 = arith.constant dense<0.000000e+00> : vector<16x4xf32>
    %30 = tpu.matmul %29, %18, %cst_19 {dimension_numbers = #tpu.dot_dimension_numbers<[1], [0], [0], [1], [0, 0, 1, 1], [], []>} : vector<16x16xf32>, vector<16x4xf32>, vector<16x4xf32> -> vector<16x4xf32>
    %c0_20 = arith.constant 0 : index
    %c96 = arith.constant 96 : index
    %31 = vector.load %arg1[%c0_20, %c96] : memref<32x256xf32, #tpu.memory_space<vmem>>, vector<4x32xf32>
    %cst_21 = arith.constant dense<0.000000e+00> : vector<16x32xf32>
    %32 = tpu.matmul %30, %31, %cst_21 {dimension_numbers = #tpu.dot_dimension_numbers<[1], [0], [0], [1], [0, 0, 1, 1], [], []>} : vector<16x4xf32>, vector<4x32xf32>, vector<16x32xf32> -> vector<16x32xf32>
    %33 = vector.extract_strided_slice %14 {offsets = [0, 4], sizes = [16, 4], strides = [1, 1]} : vector<16x96xf32> to vector<16x4xf32>
    %34 = vector.extract_strided_slice %14 {offsets = [0, 36], sizes = [16, 4], strides = [1, 1]} : vector<16x96xf32> to vector<16x4xf32>
    %35 = vector.extract_strided_slice %14 {offsets = [0, 68], sizes = [16, 4], strides = [1, 1]} : vector<16x96xf32> to vector<16x4xf32>
    %cst_22 = arith.constant dense<0.000000e+00> : vector<16x16xf32>
    %36 = tpu.matmul %33, %34, %cst_22 {dimension_numbers = #tpu.dot_dimension_numbers<[1], [1], [0], [0], [0, 0, 1, 0], [], []>} : vector<16x4xf32>, vector<16x4xf32>, vector<16x16xf32> -> vector<16x16xf32>
    %37 = arith.addf %36, %15 : vector<16x16xf32>
    %cst_23 = arith.constant dense<0xFF800000> : vector<16xf32>
    %38 = vector.multi_reduction <maximumf>, %37, %cst_23 [1] : vector<16x16xf32> to vector<16xf32>
    %39 = vector.shape_cast %38 : vector<16xf32> to vector<16x1xf32>
    %40 = vector.broadcast %39 : vector<16x1xf32> to vector<16x16xf32>
    %41 = arith.subf %37, %40 : vector<16x16xf32>
    %42 = math.exp %41 : vector<16x16xf32>
    %cst_24 = arith.constant dense<0.000000e+00> : vector<16xf32>
    %43 = vector.multi_reduction <add>, %42, %cst_24 [1] : vector<16x16xf32> to vector<16xf32>
    %44 = vector.shape_cast %43 : vector<16xf32> to vector<16x1xf32>
    %45 = vector.broadcast %44 : vector<16x1xf32> to vector<16x16xf32>
    %46 = arith.divf %42, %45 : vector<16x16xf32>
    %cst_25 = arith.constant dense<0.000000e+00> : vector<16x4xf32>
    %47 = tpu.matmul %46, %35, %cst_25 {dimension_numbers = #tpu.dot_dimension_numbers<[1], [0], [0], [1], [0, 0, 1, 1], [], []>} : vector<16x16xf32>, vector<16x4xf32>, vector<16x4xf32> -> vector<16x4xf32>
    %c4_26 = arith.constant 4 : index
    %c96_27 = arith.constant 96 : index
    %48 = vector.load %arg1[%c4_26, %c96_27] : memref<32x256xf32, #tpu.memory_space<vmem>>, vector<4x32xf32>
    %cst_28 = arith.constant dense<0.000000e+00> : vector<16x32xf32>
    %49 = tpu.matmul %47, %48, %cst_28 {dimension_numbers = #tpu.dot_dimension_numbers<[1], [0], [0], [1], [0, 0, 1, 1], [], []>} : vector<16x4xf32>, vector<4x32xf32>, vector<16x32xf32> -> vector<16x32xf32>
    %50 = arith.addf %32, %49 : vector<16x32xf32>
    %51 = vector.extract_strided_slice %14 {offsets = [0, 8], sizes = [16, 4], strides = [1, 1]} : vector<16x96xf32> to vector<16x4xf32>
    %52 = vector.extract_strided_slice %14 {offsets = [0, 40], sizes = [16, 4], strides = [1, 1]} : vector<16x96xf32> to vector<16x4xf32>
    %53 = vector.extract_strided_slice %14 {offsets = [0, 72], sizes = [16, 4], strides = [1, 1]} : vector<16x96xf32> to vector<16x4xf32>
    %cst_29 = arith.constant dense<0.000000e+00> : vector<16x16xf32>
    %54 = tpu.matmul %51, %52, %cst_29 {dimension_numbers = #tpu.dot_dimension_numbers<[1], [1], [0], [0], [0, 0, 1, 0], [], []>} : vector<16x4xf32>, vector<16x4xf32>, vector<16x16xf32> -> vector<16x16xf32>
    %55 = arith.addf %54, %15 : vector<16x16xf32>
    %cst_30 = arith.constant dense<0xFF800000> : vector<16xf32>
    %56 = vector.multi_reduction <maximumf>, %55, %cst_30 [1] : vector<16x16xf32> to vector<16xf32>
    %57 = vector.shape_cast %56 : vector<16xf32> to vector<16x1xf32>
    %58 = vector.broadcast %57 : vector<16x1xf32> to vector<16x16xf32>
    %59 = arith.subf %55, %58 : vector<16x16xf32>
    %60 = math.exp %59 : vector<16x16xf32>
    %cst_31 = arith.constant dense<0.000000e+00> : vector<16xf32>
    %61 = vector.multi_reduction <add>, %60, %cst_31 [1] : vector<16x16xf32> to vector<16xf32>
    %62 = vector.shape_cast %61 : vector<16xf32> to vector<16x1xf32>
    %63 = vector.broadcast %62 : vector<16x1xf32> to vector<16x16xf32>
    %64 = arith.divf %60, %63 : vector<16x16xf32>
    %cst_32 = arith.constant dense<0.000000e+00> : vector<16x4xf32>
    %65 = tpu.matmul %64, %53, %cst_32 {dimension_numbers = #tpu.dot_dimension_numbers<[1], [0], [0], [1], [0, 0, 1, 1], [], []>} : vector<16x16xf32>, vector<16x4xf32>, vector<16x4xf32> -> vector<16x4xf32>
    %c8 = arith.constant 8 : index
    %c96_33 = arith.constant 96 : index
    %66 = vector.load %arg1[%c8, %c96_33] : memref<32x256xf32, #tpu.memory_space<vmem>>, vector<4x32xf32>
    %cst_34 = arith.constant dense<0.000000e+00> : vector<16x32xf32>
    %67 = tpu.matmul %65, %66, %cst_34 {dimension_numbers = #tpu.dot_dimension_numbers<[1], [0], [0], [1], [0, 0, 1, 1], [], []>} : vector<16x4xf32>, vector<4x32xf32>, vector<16x32xf32> -> vector<16x32xf32>
    %68 = arith.addf %50, %67 : vector<16x32xf32>
    %69 = vector.extract_strided_slice %14 {offsets = [0, 12], sizes = [16, 4], strides = [1, 1]} : vector<16x96xf32> to vector<16x4xf32>
    %70 = vector.extract_strided_slice %14 {offsets = [0, 44], sizes = [16, 4], strides = [1, 1]} : vector<16x96xf32> to vector<16x4xf32>
    %71 = vector.extract_strided_slice %14 {offsets = [0, 76], sizes = [16, 4], strides = [1, 1]} : vector<16x96xf32> to vector<16x4xf32>
    %cst_35 = arith.constant dense<0.000000e+00> : vector<16x16xf32>
    %72 = tpu.matmul %69, %70, %cst_35 {dimension_numbers = #tpu.dot_dimension_numbers<[1], [1], [0], [0], [0, 0, 1, 0], [], []>} : vector<16x4xf32>, vector<16x4xf32>, vector<16x16xf32> -> vector<16x16xf32>
    %73 = arith.addf %72, %15 : vector<16x16xf32>
    %cst_36 = arith.constant dense<0xFF800000> : vector<16xf32>
    %74 = vector.multi_reduction <maximumf>, %73, %cst_36 [1] : vector<16x16xf32> to vector<16xf32>
    %75 = vector.shape_cast %74 : vector<16xf32> to vector<16x1xf32>
    %76 = vector.broadcast %75 : vector<16x1xf32> to vector<16x16xf32>
    %77 = arith.subf %73, %76 : vector<16x16xf32>
    %78 = math.exp %77 : vector<16x16xf32>
    %cst_37 = arith.constant dense<0.000000e+00> : vector<16xf32>
    %79 = vector.multi_reduction <add>, %78, %cst_37 [1] : vector<16x16xf32> to vector<16xf32>
    %80 = vector.shape_cast %79 : vector<16xf32> to vector<16x1xf32>
    %81 = vector.broadcast %80 : vector<16x1xf32> to vector<16x16xf32>
    %82 = arith.divf %78, %81 : vector<16x16xf32>
    %cst_38 = arith.constant dense<0.000000e+00> : vector<16x4xf32>
    %83 = tpu.matmul %82, %71, %cst_38 {dimension_numbers = #tpu.dot_dimension_numbers<[1], [0], [0], [1], [0, 0, 1, 1], [], []>} : vector<16x16xf32>, vector<16x4xf32>, vector<16x4xf32> -> vector<16x4xf32>
    %c12 = arith.constant 12 : index
    %c96_39 = arith.constant 96 : index
    %84 = vector.load %arg1[%c12, %c96_39] : memref<32x256xf32, #tpu.memory_space<vmem>>, vector<4x32xf32>
    %cst_40 = arith.constant dense<0.000000e+00> : vector<16x32xf32>
    %85 = tpu.matmul %83, %84, %cst_40 {dimension_numbers = #tpu.dot_dimension_numbers<[1], [0], [0], [1], [0, 0, 1, 1], [], []>} : vector<16x4xf32>, vector<4x32xf32>, vector<16x32xf32> -> vector<16x32xf32>
    %86 = arith.addf %68, %85 : vector<16x32xf32>
    %87 = vector.extract_strided_slice %14 {offsets = [0, 16], sizes = [16, 4], strides = [1, 1]} : vector<16x96xf32> to vector<16x4xf32>
    %88 = vector.extract_strided_slice %14 {offsets = [0, 48], sizes = [16, 4], strides = [1, 1]} : vector<16x96xf32> to vector<16x4xf32>
    %89 = vector.extract_strided_slice %14 {offsets = [0, 80], sizes = [16, 4], strides = [1, 1]} : vector<16x96xf32> to vector<16x4xf32>
    %cst_41 = arith.constant dense<0.000000e+00> : vector<16x16xf32>
    %90 = tpu.matmul %87, %88, %cst_41 {dimension_numbers = #tpu.dot_dimension_numbers<[1], [1], [0], [0], [0, 0, 1, 0], [], []>} : vector<16x4xf32>, vector<16x4xf32>, vector<16x16xf32> -> vector<16x16xf32>
    %91 = arith.addf %90, %15 : vector<16x16xf32>
    %cst_42 = arith.constant dense<0xFF800000> : vector<16xf32>
    %92 = vector.multi_reduction <maximumf>, %91, %cst_42 [1] : vector<16x16xf32> to vector<16xf32>
    %93 = vector.shape_cast %92 : vector<16xf32> to vector<16x1xf32>
    %94 = vector.broadcast %93 : vector<16x1xf32> to vector<16x16xf32>
    %95 = arith.subf %91, %94 : vector<16x16xf32>
    %96 = math.exp %95 : vector<16x16xf32>
    %cst_43 = arith.constant dense<0.000000e+00> : vector<16xf32>
    %97 = vector.multi_reduction <add>, %96, %cst_43 [1] : vector<16x16xf32> to vector<16xf32>
    %98 = vector.shape_cast %97 : vector<16xf32> to vector<16x1xf32>
    %99 = vector.broadcast %98 : vector<16x1xf32> to vector<16x16xf32>
    %100 = arith.divf %96, %99 : vector<16x16xf32>
    %cst_44 = arith.constant dense<0.000000e+00> : vector<16x4xf32>
    %101 = tpu.matmul %100, %89, %cst_44 {dimension_numbers = #tpu.dot_dimension_numbers<[1], [0], [0], [1], [0, 0, 1, 1], [], []>} : vector<16x16xf32>, vector<16x4xf32>, vector<16x4xf32> -> vector<16x4xf32>
    %c16 = arith.constant 16 : index
    %c96_45 = arith.constant 96 : index
    %102 = vector.load %arg1[%c16, %c96_45] : memref<32x256xf32, #tpu.memory_space<vmem>>, vector<4x32xf32>
    %cst_46 = arith.constant dense<0.000000e+00> : vector<16x32xf32>
    %103 = tpu.matmul %101, %102, %cst_46 {dimension_numbers = #tpu.dot_dimension_numbers<[1], [0], [0], [1], [0, 0, 1, 1], [], []>} : vector<16x4xf32>, vector<4x32xf32>, vector<16x32xf32> -> vector<16x32xf32>
    %104 = arith.addf %86, %103 : vector<16x32xf32>
    %105 = vector.extract_strided_slice %14 {offsets = [0, 20], sizes = [16, 4], strides = [1, 1]} : vector<16x96xf32> to vector<16x4xf32>
    %106 = vector.extract_strided_slice %14 {offsets = [0, 52], sizes = [16, 4], strides = [1, 1]} : vector<16x96xf32> to vector<16x4xf32>
    %107 = vector.extract_strided_slice %14 {offsets = [0, 84], sizes = [16, 4], strides = [1, 1]} : vector<16x96xf32> to vector<16x4xf32>
    %cst_47 = arith.constant dense<0.000000e+00> : vector<16x16xf32>
    %108 = tpu.matmul %105, %106, %cst_47 {dimension_numbers = #tpu.dot_dimension_numbers<[1], [1], [0], [0], [0, 0, 1, 0], [], []>} : vector<16x4xf32>, vector<16x4xf32>, vector<16x16xf32> -> vector<16x16xf32>
    %109 = arith.addf %108, %15 : vector<16x16xf32>
    %cst_48 = arith.constant dense<0xFF800000> : vector<16xf32>
    %110 = vector.multi_reduction <maximumf>, %109, %cst_48 [1] : vector<16x16xf32> to vector<16xf32>
    %111 = vector.shape_cast %110 : vector<16xf32> to vector<16x1xf32>
    %112 = vector.broadcast %111 : vector<16x1xf32> to vector<16x16xf32>
    %113 = arith.subf %109, %112 : vector<16x16xf32>
    %114 = math.exp %113 : vector<16x16xf32>
    %cst_49 = arith.constant dense<0.000000e+00> : vector<16xf32>
    %115 = vector.multi_reduction <add>, %114, %cst_49 [1] : vector<16x16xf32> to vector<16xf32>
    %116 = vector.shape_cast %115 : vector<16xf32> to vector<16x1xf32>
    %117 = vector.broadcast %116 : vector<16x1xf32> to vector<16x16xf32>
    %118 = arith.divf %114, %117 : vector<16x16xf32>
    %cst_50 = arith.constant dense<0.000000e+00> : vector<16x4xf32>
    %119 = tpu.matmul %118, %107, %cst_50 {dimension_numbers = #tpu.dot_dimension_numbers<[1], [0], [0], [1], [0, 0, 1, 1], [], []>} : vector<16x16xf32>, vector<16x4xf32>, vector<16x4xf32> -> vector<16x4xf32>
    %c20 = arith.constant 20 : index
    %c96_51 = arith.constant 96 : index
    %120 = vector.load %arg1[%c20, %c96_51] : memref<32x256xf32, #tpu.memory_space<vmem>>, vector<4x32xf32>
    %cst_52 = arith.constant dense<0.000000e+00> : vector<16x32xf32>
    %121 = tpu.matmul %119, %120, %cst_52 {dimension_numbers = #tpu.dot_dimension_numbers<[1], [0], [0], [1], [0, 0, 1, 1], [], []>} : vector<16x4xf32>, vector<4x32xf32>, vector<16x32xf32> -> vector<16x32xf32>
    %122 = arith.addf %104, %121 : vector<16x32xf32>
    %123 = vector.extract_strided_slice %14 {offsets = [0, 24], sizes = [16, 4], strides = [1, 1]} : vector<16x96xf32> to vector<16x4xf32>
    %124 = vector.extract_strided_slice %14 {offsets = [0, 56], sizes = [16, 4], strides = [1, 1]} : vector<16x96xf32> to vector<16x4xf32>
    %125 = vector.extract_strided_slice %14 {offsets = [0, 88], sizes = [16, 4], strides = [1, 1]} : vector<16x96xf32> to vector<16x4xf32>
    %cst_53 = arith.constant dense<0.000000e+00> : vector<16x16xf32>
    %126 = tpu.matmul %123, %124, %cst_53 {dimension_numbers = #tpu.dot_dimension_numbers<[1], [1], [0], [0], [0, 0, 1, 0], [], []>} : vector<16x4xf32>, vector<16x4xf32>, vector<16x16xf32> -> vector<16x16xf32>
    %127 = arith.addf %126, %15 : vector<16x16xf32>
    %cst_54 = arith.constant dense<0xFF800000> : vector<16xf32>
    %128 = vector.multi_reduction <maximumf>, %127, %cst_54 [1] : vector<16x16xf32> to vector<16xf32>
    %129 = vector.shape_cast %128 : vector<16xf32> to vector<16x1xf32>
    %130 = vector.broadcast %129 : vector<16x1xf32> to vector<16x16xf32>
    %131 = arith.subf %127, %130 : vector<16x16xf32>
    %132 = math.exp %131 : vector<16x16xf32>
    %cst_55 = arith.constant dense<0.000000e+00> : vector<16xf32>
    %133 = vector.multi_reduction <add>, %132, %cst_55 [1] : vector<16x16xf32> to vector<16xf32>
    %134 = vector.shape_cast %133 : vector<16xf32> to vector<16x1xf32>
    %135 = vector.broadcast %134 : vector<16x1xf32> to vector<16x16xf32>
    %136 = arith.divf %132, %135 : vector<16x16xf32>
    %cst_56 = arith.constant dense<0.000000e+00> : vector<16x4xf32>
    %137 = tpu.matmul %136, %125, %cst_56 {dimension_numbers = #tpu.dot_dimension_numbers<[1], [0], [0], [1], [0, 0, 1, 1], [], []>} : vector<16x16xf32>, vector<16x4xf32>, vector<16x4xf32> -> vector<16x4xf32>
    %c24 = arith.constant 24 : index
    %c96_57 = arith.constant 96 : index
    %138 = vector.load %arg1[%c24, %c96_57] : memref<32x256xf32, #tpu.memory_space<vmem>>, vector<4x32xf32>
    %cst_58 = arith.constant dense<0.000000e+00> : vector<16x32xf32>
    %139 = tpu.matmul %137, %138, %cst_58 {dimension_numbers = #tpu.dot_dimension_numbers<[1], [0], [0], [1], [0, 0, 1, 1], [], []>} : vector<16x4xf32>, vector<4x32xf32>, vector<16x32xf32> -> vector<16x32xf32>
    %140 = arith.addf %122, %139 : vector<16x32xf32>
    %141 = vector.extract_strided_slice %14 {offsets = [0, 28], sizes = [16, 4], strides = [1, 1]} : vector<16x96xf32> to vector<16x4xf32>
    %142 = vector.extract_strided_slice %14 {offsets = [0, 60], sizes = [16, 4], strides = [1, 1]} : vector<16x96xf32> to vector<16x4xf32>
    %143 = vector.extract_strided_slice %14 {offsets = [0, 92], sizes = [16, 4], strides = [1, 1]} : vector<16x96xf32> to vector<16x4xf32>
    %cst_59 = arith.constant dense<0.000000e+00> : vector<16x16xf32>
    %144 = tpu.matmul %141, %142, %cst_59 {dimension_numbers = #tpu.dot_dimension_numbers<[1], [1], [0], [0], [0, 0, 1, 0], [], []>} : vector<16x4xf32>, vector<16x4xf32>, vector<16x16xf32> -> vector<16x16xf32>
    %145 = arith.addf %144, %15 : vector<16x16xf32>
    %cst_60 = arith.constant dense<0xFF800000> : vector<16xf32>
    %146 = vector.multi_reduction <maximumf>, %145, %cst_60 [1] : vector<16x16xf32> to vector<16xf32>
    %147 = vector.shape_cast %146 : vector<16xf32> to vector<16x1xf32>
    %148 = vector.broadcast %147 : vector<16x1xf32> to vector<16x16xf32>
    %149 = arith.subf %145, %148 : vector<16x16xf32>
    %150 = math.exp %149 : vector<16x16xf32>
    %cst_61 = arith.constant dense<0.000000e+00> : vector<16xf32>
    %151 = vector.multi_reduction <add>, %150, %cst_61 [1] : vector<16x16xf32> to vector<16xf32>
    %152 = vector.shape_cast %151 : vector<16xf32> to vector<16x1xf32>
    %153 = vector.broadcast %152 : vector<16x1xf32> to vector<16x16xf32>
    %154 = arith.divf %150, %153 : vector<16x16xf32>
    %cst_62 = arith.constant dense<0.000000e+00> : vector<16x4xf32>
    %155 = tpu.matmul %154, %143, %cst_62 {dimension_numbers = #tpu.dot_dimension_numbers<[1], [0], [0], [1], [0, 0, 1, 1], [], []>} : vector<16x16xf32>, vector<16x4xf32>, vector<16x4xf32> -> vector<16x4xf32>
    %c28 = arith.constant 28 : index
    %c96_63 = arith.constant 96 : index
    %156 = vector.load %arg1[%c28, %c96_63] : memref<32x256xf32, #tpu.memory_space<vmem>>, vector<4x32xf32>
    %cst_64 = arith.constant dense<0.000000e+00> : vector<16x32xf32>
    %157 = tpu.matmul %155, %156, %cst_64 {dimension_numbers = #tpu.dot_dimension_numbers<[1], [0], [0], [1], [0, 0, 1, 1], [], []>} : vector<16x4xf32>, vector<4x32xf32>, vector<16x32xf32> -> vector<16x32xf32>
    %158 = arith.addf %140, %157 : vector<16x32xf32>
    %159 = vector.broadcast %2 : vector<1x32xf32> to vector<16x32xf32>
    %160 = arith.addf %158, %159 : vector<16x32xf32>
    %161 = arith.addf %0, %160 : vector<16x32xf32>
    %cst_65 = arith.constant dense<0.000000e+00> : vector<16xf32>
    %162 = vector.multi_reduction <add>, %161, %cst_65 [1] : vector<16x32xf32> to vector<16xf32>
    %163 = vector.shape_cast %162 : vector<16xf32> to vector<16x1xf32>
    %cst_66 = arith.constant 3.200000e+01 : f32
    %164 = vector.broadcast %cst_66 : f32 to vector<16x1xf32>
    %165 = arith.divf %163, %164 : vector<16x1xf32>
    %166 = vector.broadcast %165 : vector<16x1xf32> to vector<16x32xf32>
    %167 = arith.subf %161, %166 : vector<16x32xf32>
    %168 = arith.mulf %167, %167 : vector<16x32xf32>
    %cst_67 = arith.constant dense<0.000000e+00> : vector<16xf32>
    %169 = vector.multi_reduction <add>, %168, %cst_67 [1] : vector<16x32xf32> to vector<16xf32>
    %170 = vector.shape_cast %169 : vector<16xf32> to vector<16x1xf32>
    %cst_68 = arith.constant 3.200000e+01 : f32
    %171 = vector.broadcast %cst_68 : f32 to vector<16x1xf32>
    %172 = arith.divf %170, %171 : vector<16x1xf32>
    %cst_69 = arith.constant 9.99999974E-6 : f32
    %173 = vector.broadcast %cst_69 : f32 to vector<16x1xf32>
    %174 = arith.addf %172, %173 : vector<16x1xf32>
    %175 = math.rsqrt %174 : vector<16x1xf32>
    %176 = vector.broadcast %175 : vector<16x1xf32> to vector<16x32xf32>
    %177 = arith.mulf %167, %176 : vector<16x32xf32>
    %178 = vector.broadcast %5 : vector<1x32xf32> to vector<16x32xf32>
    %179 = arith.mulf %177, %178 : vector<16x32xf32>
    %180 = vector.broadcast %6 : vector<1x32xf32> to vector<16x32xf32>
    %181 = arith.addf %179, %180 : vector<16x32xf32>
    %cst_70 = arith.constant dense<0.000000e+00> : vector<16x64xf32>
    %182 = tpu.matmul %181, %10, %cst_70 {dimension_numbers = #tpu.dot_dimension_numbers<[1], [0], [0], [1], [0, 0, 1, 1], [], []>} : vector<16x32xf32>, vector<32x64xf32>, vector<16x64xf32> -> vector<16x64xf32>
    %183 = vector.broadcast %3 : vector<1x64xf32> to vector<16x64xf32>
    %184 = arith.addf %182, %183 : vector<16x64xf32>
    %cst_71 = arith.constant 0.000000e+00 : f32
    %185 = vector.broadcast %cst_71 : f32 to vector<16x64xf32>
    %186 = arith.maximumf %184, %185 : vector<16x64xf32>
    %cst_72 = arith.constant dense<0.000000e+00> : vector<16x32xf32>
    %187 = tpu.matmul %186, %11, %cst_72 {dimension_numbers = #tpu.dot_dimension_numbers<[1], [1], [0], [0], [0, 0, 1, 0], [], []>} : vector<16x64xf32>, vector<32x64xf32>, vector<16x32xf32> -> vector<16x32xf32>
    %188 = vector.broadcast %4 : vector<1x32xf32> to vector<16x32xf32>
    %189 = arith.addf %187, %188 : vector<16x32xf32>
    %190 = arith.addf %181, %189 : vector<16x32xf32>
    %cst_73 = arith.constant dense<0.000000e+00> : vector<16xf32>
    %191 = vector.multi_reduction <add>, %190, %cst_73 [1] : vector<16x32xf32> to vector<16xf32>
    %192 = vector.shape_cast %191 : vector<16xf32> to vector<16x1xf32>
    %cst_74 = arith.constant 3.200000e+01 : f32
    %193 = vector.broadcast %cst_74 : f32 to vector<16x1xf32>
    %194 = arith.divf %192, %193 : vector<16x1xf32>
    %195 = vector.broadcast %194 : vector<16x1xf32> to vector<16x32xf32>
    %196 = arith.subf %190, %195 : vector<16x32xf32>
    %197 = arith.mulf %196, %196 : vector<16x32xf32>
    %cst_75 = arith.constant dense<0.000000e+00> : vector<16xf32>
    %198 = vector.multi_reduction <add>, %197, %cst_75 [1] : vector<16x32xf32> to vector<16xf32>
    %199 = vector.shape_cast %198 : vector<16xf32> to vector<16x1xf32>
    %cst_76 = arith.constant 3.200000e+01 : f32
    %200 = vector.broadcast %cst_76 : f32 to vector<16x1xf32>
    %201 = arith.divf %199, %200 : vector<16x1xf32>
    %cst_77 = arith.constant 9.99999974E-6 : f32
    %202 = vector.broadcast %cst_77 : f32 to vector<16x1xf32>
    %203 = arith.addf %201, %202 : vector<16x1xf32>
    %204 = math.rsqrt %203 : vector<16x1xf32>
    %205 = vector.broadcast %204 : vector<16x1xf32> to vector<16x32xf32>
    %206 = arith.mulf %196, %205 : vector<16x32xf32>
    %207 = vector.broadcast %7 : vector<1x32xf32> to vector<16x32xf32>
    %208 = arith.mulf %206, %207 : vector<16x32xf32>
    %209 = vector.broadcast %8 : vector<1x32xf32> to vector<16x32xf32>
    %210 = arith.addf %208, %209 : vector<16x32xf32>
    %c0_78 = arith.constant 0 : index
    %c0_79 = arith.constant 0 : index
    %211 = vector.load %arg4[%c0_78, %c0_79] : memref<16x32xf32, #tpu.memory_space<vmem>>, vector<16x32xf32>
    tpu.vector_store %arg4[%c0_78, %c0_79], %210 {strides = array<i32>} : memref<16x32xf32, #tpu.memory_space<vmem>>, vector<16x32xf32>,
    return
  }
}

</mosaic_0001>

<bundles_post_ra>
// kernel: tpu_custom_call.1
= control target key start
LH: loop header
LB: loop body
LE: loop exit
PB: predicated region body
PF: predicated region fallthrough
CT: control target
= control target key end

     0   :  { %9 = vsyncpa [#allocation3], 0  ;;  %s3980_s0 = inlined_call_operand.hbm [shape: f32[16,32], index: 0, kind: input, shape index: {}]   ;;  %s3981_s1 = inlined_call_operand.hbm [shape: f32[32,256], index: 1, kind: input, shape index: {}]   ;;  %s3982_s2 = inlined_call_operand.hbm [shape: f32[8,128], index: 2, kind: input, shape index: {}]   ;;  %s3983_s3 = inlined_call_operand.hbm [shape: f32[16,16], index: 3, kind: input, shape index: {}]   ;;  %s3984_s4 = inlined_call_operand.hbm [shape: f32[16,32], index: 4, kind: output, shape index: {}]  }
   0x1   :  { %10 = vsyncpa [#allocation6], 0 }
   0x2   :  { %11 = vsyncpa [#allocation9], 0 }
   0x3   :  { %12 = vsyncpa [#allocation4], 0  ;;  %s3609_s15 = smov [#allocation5]   ;;  %s3491_s19 = scalar_lea.hbm %s3981_s1, 1024 }
   0x4   :  { %s30_s16 = sshll.u32 %s3609_s15, 4  ;;  %p3492_p0 = scmp.ne.s32.totalorder %s3981_s1, %s3491_s19  ;;  %s31_s16 = int_to_ptr.vmem [resolvable:$true] %s30_s16 }
   0x5   :  { %p3495_p1 = scmp.lt.u32.totalorder %s3491_s19, %s3981_s1 }
   0x7   :  { %p3497_p2 = pnand %p3495_p1, %p3492_p0 }
   0x9   :  { %3500 = shalt.err (!%p3497_p2)
}
   0xa   :  { %s3501_s24 = scalar_lea.vmem %s31_s16, 1024  ;;  %p3506_p4 = scmp.lt.s32.totalorder %s31_s16, %s31_s16 }
   0xb   :  { %p3502_p3 = scmp.ne.s32.totalorder %s31_s16, %s3501_s24  ;;  %p3507_p5 = scmp.lt.s32.totalorder %s3501_s24, %s3501_s24 }
   0xd   :  { %p3508_p6 = por %p3507_p5, %p3506_p4 }
   0xf   :  { %p3509_p7 = pnand %p3508_p6, %p3502_p3 }
  0x11   :  { %3512 = shalt.err (!%p3509_p7)
}
  0x12   :  { %s3610_s25 = smov 256   ;;  %s3611_s26 = smov 16  }
  0x13   :  { %36 = dma.hbm_to_vmem [thread:$0]  %s3981_s1, 1024, %s31_s16, [#allocation6], %s3610_s25, %s3610_s25, %s3611_s26  }
  0x14   :  { %s3612_s29 = smov [#allocation2]   ;;  %s3513_s7 = scalar_lea.hbm %s3980_s0, 256 }
  0x15   :  { %s18_s30 = sshll.u32 %s3612_s29, 4  ;;  %p3514_p8 = scmp.ne.s32.totalorder %s3980_s0, %s3513_s7  ;;  %s19_s30 = int_to_ptr.vmem [resolvable:$true] %s18_s30 }
  0x16   :  { %p3517_p9 = scmp.lt.u32.totalorder %s3513_s7, %s3980_s0 }
  0x18   :  { %p3519_p10 = pnand %p3517_p9, %p3514_p8 }
  0x1a   :  { %3522 = shalt.err (!%p3519_p10)
}
  0x1b   :  { %s3523_s12 = scalar_lea.vmem %s19_s30, 256  ;;  %p3528_p12 = scmp.lt.s32.totalorder %s19_s30, %s19_s30 }
  0x1c   :  { %p3524_p11 = scmp.ne.s32.totalorder %s19_s30, %s3523_s12  ;;  %p3529_p13 = scmp.lt.s32.totalorder %s3523_s12, %s3523_s12 }
  0x1e   :  { %p3530_p0 = por %p3529_p13, %p3528_p12 }
  0x20   :  { %p3531_p1 = pnand %p3530_p0, %p3524_p11 }
  0x22   :  { %3534 = shalt.err (!%p3531_p1)
}
  0x23   :  { %s3613_s1 = smov 128   ;;  %s3614_s13 = smov 8  }
  0x24   :  { %24 = dma.hbm_to_vmem [thread:$0]  %s3980_s0, 256, %s19_s30, [#allocation3], %s3613_s1, %s3613_s1, %s3614_s13  }
  0x25   :  { %s3615_s16 = smov [#allocation7]   ;;  %s3616_s18 = smov [#allocation8]  }
  0x26   :  { %s43_s17 = sshll.u32 %s3615_s16, 4  ;;  %s52_s19 = sshll.u32 %s3616_s18, 4  ;;  %s44_s17 = int_to_ptr.vmem [resolvable:$true] %s43_s17  ;;  %s3694_s19 = int_to_ptr.vmem [resolvable:$true] %s52_s19 }
  0x27   :  { %s3535_s22 = scalar_lea.hbm %s3982_s2, 128 }
  0x28   :  { %p3536_p2 = scmp.ne.s32.totalorder %s3982_s2, %s3535_s22  ;;  %p3539_p3 = scmp.lt.u32.totalorder %s3535_s22, %s3982_s2 }
  0x2a   :  { %p3541_p4 = pnand %p3539_p3, %p3536_p2 }
  0x2c   :  { %3544 = shalt.err (!%p3541_p4)
}
  0x2d   :  { %s3545_s0 = scalar_lea.vmem %s44_s17, 128  ;;  %p3550_p6 = scmp.lt.s32.totalorder %s44_s17, %s44_s17 }
  0x2e   :  { %p3546_p5 = scmp.ne.s32.totalorder %s44_s17, %s3545_s0  ;;  %p3551_p7 = scmp.lt.s32.totalorder %s3545_s0, %s3545_s0 }
  0x30   :  { %p3552_p8 = por %p3551_p7, %p3550_p6 }
  0x32   :  { %p3553_p9 = pnand %p3552_p8, %p3546_p5 }
  0x34   :  { %3556 = shalt.err (!%p3553_p9)
}
  0x35   :  { %46 = dma.hbm_to_vmem [thread:$0]  %s3982_s2, 128, %s44_s17, [#allocation6]  }
  0x36   :  { %s3557_s5 = scalar_lea.hbm %s3983_s3, 256 }
  0x37   :  { %p3558_p10 = scmp.ne.s32.totalorder %s3983_s3, %s3557_s5  ;;  %p3561_p11 = scmp.lt.u32.totalorder %s3557_s5, %s3983_s3 }
  0x39   :  { %p3563_p12 = pnand %p3561_p11, %p3558_p10 }
  0x3b   :  { %3566 = shalt.err (!%p3563_p12)
}
  0x3c   :  { %s3567_s10 = scalar_lea.vmem %s3694_s19, 256  ;;  %p3572_p0 = scmp.lt.s32.totalorder %s3694_s19, %s3694_s19 }
  0x3d   :  { %p3568_p13 = scmp.ne.s32.totalorder %s3694_s19, %s3567_s10  ;;  %p3573_p1 = scmp.lt.s32.totalorder %s3567_s10, %s3567_s10 }
  0x3f   :  { %p3574_p2 = por %p3573_p1, %p3572_p0 }
  0x41   :  { %p3575_p3 = pnand %p3574_p2, %p3568_p13 }
  0x43   :  { %3578 = shalt.err (!%p3575_p3)
}
  0x44   :  { %58 = dma.hbm_to_vmem [thread:$0]  %s3983_s3, 256, %s3694_s19, [#allocation9], %s3613_s1, %s3613_s1, %s3614_s13  }
  0x45   :  { %3601 = dma.done.wait [#allocation3], 256  }
  0x46   :  { %3602 = vsyncadd [#allocation3], 4294967040 }
  0x47   :  { %3603 = dma.done.wait [#allocation6], 1152  }
  0x48   :  { %3604 = vsyncadd [#allocation6], 4294966144 }
  0x49   :  { %3605 = dma.done.wait [#allocation9], 256  }
  0x4a   :  { %3606 = vsyncadd [#allocation9], 4294967040  ;;  %vm93_vm0 = vcmask 261120   ;;  %v81_v0 = vld [vmem:[#allocation5] sm:$0xff]  ;;  %v82_v1 = vld [vmem:[#allocation5 + $0x10] sm:$0xff]  ;;  %vm183_vm1 = vcmask 31744  }
  0x4b   :  { %v83_v2 = vld [vmem:[#allocation5 + $0x20] sm:$0xff]  ;;  %v3172_v3 = vpack.c.bf16 %v82_v1, %v81_v0  ;;  %v84_v4 = vld [vmem:[#allocation5 + $0x30] sm:$0xff]  ;;  %v72_v7 = vld [vmem:[#allocation2 + $0x8] sm:$0xff]  ;;  %s3617_s3 = smov 124   ;;  %s3618_s12 = smov 96   ;;  %vm267_vm3 = vcmask 130048  }
  0x4c   :  { %v71_v5 = vld [vmem:[#allocation2] sm:$0xff]  ;;  %v3176_v6 = vpack.c.bf16 %v84_v4, %v83_v2  ;;  %v2791_v8 = vld [vmem:[#allocation7] ss:$0 sm:$0xff]  ;;  %s3619_s14 = smov 92   ;;  %s3620_s15 = smov 120   ;;  %vm3749_vm2 = vmpackc.low %vm183_vm1, %vm183_vm1  ;;  %vm589_vm4 = vcmask 1043456  }
  0x4d   :  { %2995 = vmatprep.mubr.msk.f32.mxu1 %vm93_vm0, %v71_v5  ;;  %3173 = vmatprep.subr.bf16.mxu1 %v3172_v3  ;;  %s3621_s16 = smov 88   ;;  %v3771_v31 = vld [vmem:[#allocation8 + $0x8] sm:$0xff]  ;;  %v3773_v32 = vld [vmem:[#allocation8] sm:$0xff]  ;;  %s3622_s17 = smov 60   ;;  %vm2640_vm5 = vcmask 523264  }
  0x4e   :  { %3175 = vmatpush3.bf16.msra.mxu1 %v3172_v3  ;;  %s3623_s18 = smov 84   ;;  %s3624_s19 = smov 64   ;;  %vm3269_vm6 = vmpackc.low %vm2640_vm5, %vm2640_vm5 }
  0x4f   :  { %3177 = vmatprep.subr.bf16.mxu1 %v3176_v6  ;;  %s3625_s20 = smov 116   ;;  %s3626_s21 = smov 32  }
  0x50   :  { %s3627_s22 = smov 56   ;;  %s3628_s23 = smov 80  }
  0x51   :  { %s3629_s24 = smov 112   ;;  %s3630_s25 = smov 76  }
  0x52   :  { %3179 = vmatpush3.bf16.msra.mxu1 %v3176_v6  ;;  %s3631_s26 = smov 108   ;;  %s3632_s0 = smov 52  }
  0x53   :  { %s3633_s27 = smov 48   ;;  %s3634_s28 = smov 104  }
  0x54   :  { %s3635_s29 = smov 72   ;;  %s3636_s30 = smov 68  }
  0x55   :  { %2996 = vmatmul.mubr.msk.f32.vlgmr.msra.gmra.mrb[0].mxu1 %vm93_vm0, %v72_v7  ;;  %v578_v7 = vld [vmem:[#allocation5] sm:$0xf0]  ;;  %s3637_s5 = smov 100   ;;  %s3638_s6 = smov 44  }
  0x56   :  { %s3639_s7 = smov 40   ;;  %s3640_s8 = smov 36  }
  0x57   :  { %s3641_s9 = smov [#allocation10]  }
  0x58   :  { %s2777_s10 = sshll.u32 %s3641_s9, 4  ;;  %s2778_s10 = int_to_ptr.vmem [resolvable:$true] %s2777_s10 }
  0x59   :  { %s3579_s2 = scalar_lea.vmem %s2778_s10, 256  ;;  %p3584_p5 = scmp.lt.s32.totalorder %s2778_s10, %s2778_s10 }
  0x5a   :  { %p3580_p4 = scmp.ne.s32.totalorder %s2778_s10, %s3579_s2  ;;  %p3585_p6 = scmp.lt.s32.totalorder %s3579_s2, %s3579_s2 }
  0x5c   :  { %p3586_p7 = por %p3585_p6, %p3584_p5 }
  0x5e   :  { %p3587_p8 = pnand %p3586_p7, %p3580_p4 }
 0x128   :  { %v2997_v9 = vpop.f32.mrb[0].mxu1 }
 0x129   :  { %v3730_v10 = vadd.f32 %v2997_v9, %v2791_v8  ;;  %v166_v11 = vpop.f32.mrb[1].mxu1 }
 0x12a   :  { %v3732_v12 = vadd.f32 %v2791_v8, %v166_v11  ;;  %v580_v8 = vrot.slane %v578_v7, 4 }
 0x12c   :  { %378 = vrot.lane.b32.xlu1 %v3732_v12, %s3617_s3  ;;  %3002 = vmatprep.mubr.msk.f32.mxu1 %vm183_vm1, %v3732_v12  ;;  %v3739_v13 = vpack.i.bf16 %v3730_v10, %v3732_v12 }
 0x12e   :  { %3328 = vrot.lane.b32.xlu0 %v3739_v13, %s3618_s12 }
 0x130   :  { %380 = vrot.lane.b32.xlu1 %v3730_v10, %s3617_s3 }
 0x132   :  { %3333 = vrot.lane.b32.xlu0 %v3739_v13, %s3619_s14 }
 0x134   :  { %753 = vrot.lane.b32.xlu1 %v3732_v12, %s3620_s15 }
 0x136   :  { %3338 = vrot.lane.b32.xlu0 %v3739_v13, %s3621_s16 }
 0x13a   :  { %755 = vrot.lane.b32.xlu0 %v3730_v10, %s3620_s15 }
 0x19e   :  { %v379_v24 = vpop.permute.xlu1 %378 }
 0x1a0   :  { %v3329_v14 = vpop.permute.xlu0 %3328 }
 0x1a1   :  { %v3331_v15 = vunpack.i.h.bf16 %v3329_v14  ;;  %v3330_v16 = vunpack.i.l.bf16 %v3329_v14 }
 0x1a2   :  { %v381_v28 = vpop.permute.xlu1 %380 }
 0x1a3   :  { %v3180_v18 = vpack.c.bf16 %v3331_v15, %v3330_v16 }
 0x1a4   :  { %v3334_v19 = vpop.permute.xlu0 %3333 }
 0x1a5   :  { %v3336_v20 = vunpack.i.h.bf16 %v3334_v19  ;;  %v3335_v21 = vunpack.i.l.bf16 %v3334_v19  ;;  %3182 = vmatprep.subr.msk.bf16.mxu1 %vm3749_vm2, %v3180_v18 }
 0x1a6   :  { %3185 = vmatpush3.bf16.xpose.msk.msra.mxu1 %vm3749_vm2, %v3180_v18  ;;  %v754_v29 = vpop.permute.xlu1 %753 }
 0x1a7   :  { %v3190_v22 = vpack.c.bf16 %v3336_v20, %v3335_v21 }
 0x1a8   :  { %v3339_v23 = vpop.permute.xlu0 %3338 }
 0x1a9   :  { %v3341_v25 = vunpack.i.h.bf16 %v3339_v23  ;;  %v3340_v26 = vunpack.i.l.bf16 %v3339_v23  ;;  %3192 = vmatprep.subr.msk.bf16.mxu1 %vm3749_vm2, %v3190_v22 }
 0x1ab   :  { %v3200_v27 = vpack.c.bf16 %v3341_v25, %v3340_v26 }
 0x1ac   :  { %v756_v30 = vpop.permute.xlu0 %755 }
 0x1ad   :  { %3003 = vmatmul.mubr.msk.f32.vlgmr.msra.gmra.mrb[2].mxu1 %vm183_vm1, %v3730_v10 }
 0x1ae   :  { %3195 = vmatpush3.bf16.xpose.msk.msra.mxu1 %vm3749_vm2, %v3190_v22  ;;  %3016 = vmatprep.mubr.msk.f32.mxu1 %vm183_vm1, %v379_v24 }
 0x1af   :  { %3202 = vmatprep.subr.msk.bf16.mxu1 %vm3749_vm2, %v3200_v27 }
 0x1b5   :  { %3017 = vmatmul.mubr.msk.f32.vlgmr.msra.gmra.mrb[4].mxu1 %vm183_vm1, %v381_v28 }
 0x1b6   :  { %3205 = vmatpush3.bf16.xpose.msk.msra.mxu1 %vm3749_vm2, %v3200_v27  ;;  %3040 = vmatprep.mubr.msk.f32.mxu1 %vm183_vm1, %v754_v29 }
 0x1bd   :  { %3041 = vmatmul.mubr.msk.f32.vlgmr.msra.gmra.mrb[6].mxu1 %vm183_vm1, %v756_v30 }
 0x280   :  { %v3004_v33 = vpop.f32.mrb[2].mxu1 }
 0x281   :  { %v264_v34 = vadd.f32 %v3004_v33, %v3771_v31  ;;  %v258_v35 = vpop.f32.mrb[3].mxu1 }
 0x282   :  { %v259_v36 = vadd.f32 %v258_v35, %v3773_v32 }
 0x283   :  { %v271_v37 = vsel %vm267_vm3, %v264_v34, -inf }
 0x284   :  { %272 = vmax.xlane.f32.xlu0 %v271_v37  ;;  %v268_v38 = vsel %vm267_vm3, %v259_v36, -inf }
 0x285   :  { %269 = vmax.xlane.f32.xlu1 %v268_v38 }
 0x288   :  { %v3018_v39 = vpop.f32.mrb[4].mxu1 }
 0x289   :  { %v466_v40 = vadd.f32 %v3018_v39, %v3771_v31  ;;  %v460_v41 = vpop.f32.mrb[5].mxu1 }
 0x28a   :  { %v461_v42 = vadd.f32 %v460_v41, %v3773_v32 }
 0x28b   :  { %v472_v43 = vsel %vm267_vm3, %v466_v40, -inf }
 0x28c   :  { %473 = vmax.xlane.f32.xlu1 %v472_v43  ;;  %v469_v44 = vsel %vm267_vm3, %v461_v42, -inf }
 0x28d   :  { %470 = vmax.xlane.f32.xlu0 %v469_v44 }
 0x290   :  { %v3042_v45 = vpop.f32.mrb[6].mxu1 }
 0x291   :  { %v835_v46 = vpop.f32.mrb[7].mxu1  ;;  %v841_v4 = vadd.f32 %v3042_v45, %v3771_v31 }
 0x292   :  { %v836_v3 = vadd.f32 %v835_v46, %v3773_v32 }
 0x293   :  { %v847_v6 = vsel %vm267_vm3, %v841_v4, -inf }
 0x294   :  { %v844_v5 = vsel %vm267_vm3, %v836_v3, -inf }
 0x311   :  { %v273_v47 = vpop.xlane.xlu0 %272 }
 0x312   :  { %v275_v48 = vsub.f32 %v264_v34, %v273_v47  ;;  %v270_v49 = vpop.xlane.xlu1 %269 }
 0x313   :  { %v274_v50 = vsub.f32 %v259_v36, %v270_v49 }
 0x314   :  { %v278_v51 = vmul.f32 1.442695, %v275_v48 }
 0x315   :  { %v276_v52 = vmul.f32 1.442695, %v274_v50 }
 0x316   :  { %3417 = vpow2.f32 %v278_v51 }
 0x317   :  { %3419 = vpow2.f32 %v276_v52 }
 0x319   :  { %v474_v53 = vpop.xlane.xlu1 %473 }
 0x31a   :  { %v476_v54 = vsub.f32 %v466_v40, %v474_v53  ;;  %v471_v55 = vpop.xlane.xlu0 %470 }
 0x31b   :  { %v475_v56 = vsub.f32 %v461_v42, %v471_v55 }
 0x31c   :  { %v479_v57 = vmul.f32 1.442695, %v476_v54 }
 0x31d   :  { %v477_v58 = vmul.f32 1.442695, %v475_v56 }
 0x31e   :  { %3421 = vpow2.f32 %v479_v57  ;;  %v377_v57 = vld [vmem:[#allocation5] sm:$0xf] }
 0x31f   :  { %3423 = vpow2.f32 %v477_v58 }
 0x320   :  { %v3783_v59 = vpop.eup %3417 }
 0x321   :  { %v3420_v60 = vpop.eup %3419  ;;  %v283_v61 = vsel %vm267_vm3, %v3783_v59, 0.0 }
 0x322   :  { %284 = vadd.xlane.f32.xlu1 %v283_v61  ;;  %v280_v62 = vsel %vm267_vm3, %v3420_v60, 0.0 }
 0x323   :  { %281 = vadd.xlane.f32.xlu0 %v280_v62 }
 0x328   :  { %v3788_v63 = vpop.eup %3421 }
 0x329   :  { %v3790_v0 = vpop.eup %3423  ;;  %v484_v1 = vsel %vm267_vm3, %v3788_v63, 0.0 }
 0x32a   :  { %485 = vadd.xlane.f32.xlu1 %v484_v1  ;;  %v481_v2 = vsel %vm267_vm3, %v3790_v0, 0.0 }
 0x32b   :  { %482 = vadd.xlane.f32.xlu0 %v481_v2 }
 0x33b   :  { %3348 = vrot.lane.b32.xlu1 %v3739_v13, %s3622_s17 }
 0x33f   :  { %3353 = vrot.lane.b32.xlu1 %v3739_v13, %s3623_s18 }
 0x341   :  { %3343 = vrot.lane.b32.xlu0 %v3739_v13, %s3624_s19 }
 0x343   :  { %1044 = vrot.lane.b32.xlu1 %v3730_v10, %s3625_s20 }
 0x345   :  { %1042 = vrot.lane.b32.xlu0 %v3732_v12, %s3625_s20 }
 0x364   :  { %845 = vmax.xlane.f32.xlu0 %v844_v5 }
 0x367   :  { %848 = vmax.xlane.f32.xlu1 %v847_v6 }
 0x378   :  { %581 = vrot.lane.b32.xlu1 %v580_v8, %s3626_s21 }
 0x37c   :  { %3358 = vrot.lane.b32.xlu1 %v3739_v13, %s3627_s22 }
 0x380   :  { %3363 = vrot.lane.b32.xlu1 %v3739_v13, %s3628_s23 }
 0x384   :  { %1334 = vrot.lane.b32.xlu1 %v3730_v10, %s3629_s24 }
 0x3af   :  { %v285_v11 = vpop.xlane.xlu1 %284 }
 0x3b0   :  { %v282_v9 = vpop.xlane.xlu0 %281 }
 0x3b1   :  { %3425 = vrcp.f32 %v282_v9 }
 0x3b2   :  { %3427 = vrcp.f32 %v285_v11 }
 0x3b7   :  { %v486_v14 = vpop.xlane.xlu1 %485 }
 0x3b8   :  { %v483_v15 = vpop.xlane.xlu0 %482 }
 0x3b9   :  { %3429 = vrcp.f32 %v483_v15 }
 0x3ba   :  { %3431 = vrcp.f32 %v486_v14 }
 0x3bb   :  { %v3426_v16 = vpop.eup %3425  ;;  %v3349_v18 = vpop.permute.xlu1 %3348 }
 0x3bc   :  { %v3344_v19 = vpop.permute.xlu0 %3343  ;;  %v287_v20 = vmul.f32 %v3426_v16, %v3420_v60  ;;  %v3351_v21 = vunpack.i.h.bf16 %v3349_v18  ;;  %v3350_v22 = vunpack.i.l.bf16 %v3349_v18  ;;  %v3428_v27 = vpop.eup %3427 }
 0x3bd   :  { %v3346_v23 = vunpack.i.h.bf16 %v3344_v19  ;;  %v3345_v24 = vunpack.i.l.bf16 %v3344_v19  ;;  %v289_v36 = vmul.f32 %v3428_v27, %v3783_v59 }
 0x3be   :  { %3009 = vmatprep.mubr.msk.f32.mxu0 %vm267_vm3, %v287_v20  ;;  %v3196_v33 = vpack.c.bf16 %v3351_v21, %v3350_v22  ;;  %v953_v20 = vld [vmem:[#allocation5 + $0x10] sm:$0xf] }
 0x3bf   :  { %v3354_v25 = vpop.permute.xlu1 %3353  ;;  %v3186_v26 = vpack.c.bf16 %v3346_v23, %v3345_v24 }
 0x3c0   :  { %v3356_v28 = vunpack.i.h.bf16 %v3354_v25  ;;  %v3355_v29 = vunpack.i.l.bf16 %v3354_v25  ;;  %v1043_v30 = vpop.permute.xlu0 %1042 }
 0x3c1   :  { %3187 = vmatprep.subr.bf16.mxu0 %v3186_v26  ;;  %3059 = vmatprep.mubr.msk.f32.mxu1 %vm183_vm1, %v1043_v30 }
 0x3c2   :  { %v3210_v34 = vpack.c.bf16 %v3356_v28, %v3355_v29  ;;  %3189 = vmatpush3.bf16.msra.mxu0 %v3186_v26 }
 0x3c3   :  { %v3430_v35 = vpop.eup %3429  ;;  %3197 = vmatprep.subr.bf16.mxu0 %v3196_v33  ;;  %v1045_v40 = vpop.permute.xlu1 %1044 }
 0x3c4   :  { %v3432_v37 = vpop.eup %3431  ;;  %3212 = vmatprep.subr.msk.bf16.mxu1 %vm3749_vm2, %v3210_v34  ;;  %v488_v38 = vmul.f32 %v3430_v35, %v3790_v0 }
 0x3c5   :  { %3010 = vmatmul.mubr.msk.f32.vlgmr.msra.gmra.mrb[0].mxu0 %vm267_vm3, %v289_v36  ;;  %3215 = vmatpush3.bf16.xpose.msk.msra.mxu1 %vm3749_vm2, %v3210_v34  ;;  %v490_v39 = vmul.f32 %v3432_v37, %v3788_v63 }
 0x3c6   :  { %3199 = vmatpush3.bf16.msra.mxu0 %v3196_v33  ;;  %3023 = vmatprep.mubr.msk.f32.mxu0 %vm267_vm3, %v488_v38 }
 0x3c9   :  { %3024 = vmatmul.mubr.msk.f32.vlgmr.msra.gmra.mrb[2].mxu0 %vm267_vm3, %v490_v39 }
 0x3cc   :  { %3060 = vmatmul.mubr.msk.f32.vlgmr.msra.gmra.mrb[8].mxu1 %vm183_vm1, %v1045_v40 }
 0x3f1   :  { %v846_v41 = vpop.xlane.xlu0 %845 }
 0x3f2   :  { %v850_v42 = vsub.f32 %v836_v3, %v846_v41 }
 0x3f4   :  { %v849_v43 = vpop.xlane.xlu1 %848  ;;  %v852_v45 = vmul.f32 1.442695, %v850_v42 }
 0x3f5   :  { %v851_v44 = vsub.f32 %v841_v4, %v849_v43 }
 0x3f7   :  { %v854_v46 = vmul.f32 1.442695, %v851_v44 }
 0x3f8   :  { %v582_v47 = vpop.permute.xlu1 %581 }
 0x3f9   :  { %3433 = vpow2.f32 %v854_v46  ;;  %3026 = vmatprep.subr.msk.mxu0 %vm589_vm4, %v582_v47 }
 0x3fa   :  { %3435 = vpow2.f32 %v852_v45  ;;  %3027 = vmatpush3.msk.msra.mxu0 %vm589_vm4, %v582_v47 }
 0x3fc   :  { %v3359_v48 = vpop.permute.xlu1 %3358 }
 0x3fd   :  { %v3361_v63 = vunpack.i.h.bf16 %v3359_v48  ;;  %v3360_v0 = vunpack.i.l.bf16 %v3359_v48 }
 0x3ff   :  { %v3206_v4 = vpack.c.bf16 %v3361_v63, %v3360_v0 }
 0x400   :  { %v3364_v49 = vpop.permute.xlu1 %3363 }
 0x401   :  { %v3366_v50 = vunpack.i.h.bf16 %v3364_v49  ;;  %v3365_v51 = vunpack.i.l.bf16 %v3364_v49 }
 0x403   :  { %v3434_v52 = vpop.eup %3433  ;;  %v3220_v53 = vpack.c.bf16 %v3366_v50, %v3365_v51 }
 0x404   :  { %v859_v54 = vsel %vm267_vm3, %v3434_v52, 0.0  ;;  %v3436_v55 = vpop.eup %3435  ;;  %v1335_v6 = vpop.permute.xlu1 %1334 }
 0x405   :  { %860 = vadd.xlane.f32.xlu0 %v859_v54  ;;  %3222 = vmatprep.subr.msk.bf16.mxu1 %vm3749_vm2, %v3220_v53  ;;  %v856_v56 = vsel %vm267_vm3, %v3436_v55, 0.0 }
 0x406   :  { %3225 = vmatpush3.bf16.xpose.msk.msra.mxu1 %vm3749_vm2, %v3220_v53 }
 0x409   :  { %857 = vadd.xlane.f32.xlu0 %v856_v56 }
 0x41f   :  { %668 = vrot.lane.b32.xlu0 %v377_v57, %s3626_s21 }
 0x423   :  { %1332 = vrot.lane.b32.xlu0 %v3732_v12, %s3629_s24 }
 0x492   :  { %v861_v58 = vpop.xlane.xlu0 %860 }
 0x496   :  { %v858_v59 = vpop.xlane.xlu0 %857 }
 0x497   :  { %3437 = vrcp.f32 %v858_v59 }
 0x498   :  { %v3011_v60 = vpop.f32.mrb[0].mxu0  ;;  %3439 = vrcp.f32 %v861_v58 }
 0x499   :  { %v368_v61 = vpop.f32.mrb[1].mxu0 }
 0x49a   :  { %v669_v62 = vpop.permute.xlu0 %668 }
 0x49b   :  { %3031 = vmatprep.subr.msk.mxu0 %vm589_vm4, %v669_v62 }
 0x49c   :  { %v3025_v1 = vpop.f32.mrb[2].mxu0 }
 0x49d   :  { %v569_v2 = vpop.f32.mrb[3].mxu0 }
 0x49e   :  { %v1333_v3 = vpop.permute.xlu0 %1332  ;;  %3028 = vmatprep.mubr.msk.f32.mxu0 %vm183_vm1, %v569_v2 }
 0x49f   :  { %3029 = vmatmul.mubr.msk.f32.vlgmr.msra.gmra.mrb[4].mxu0 %vm183_vm1, %v3025_v1  ;;  %v3061_v5 = vpop.f32.mrb[8].mxu1  ;;  %3078 = vmatprep.mubr.msk.f32.mxu1 %vm183_vm1, %v1333_v3 }
 0x4a0   :  { %3032 = vmatpush3.msk.msra.mxu0 %vm589_vm4, %v669_v62  ;;  %v1130_v7 = vadd.f32 %v3061_v5, %v3771_v31  ;;  %3033 = vmatprep.mubr.msk.f32.mxu0 %vm183_vm1, %v368_v61  ;;  %v1124_v8 = vpop.f32.mrb[9].mxu1 }
 0x4a1   :  { %3207 = vmatprep.subr.bf16.mxu0 %v3206_v4  ;;  %v1125_v9 = vadd.f32 %v1124_v8, %v3773_v32  ;;  %3079 = vmatmul.mubr.msk.f32.vlgmr.msra.gmra.mrb[10].mxu1 %vm183_vm1, %v1335_v6  ;;  %v3438_v14 = vpop.eup %3437 }
 0x4a2   :  { %v1136_v11 = vsel %vm267_vm3, %v1130_v7, -inf  ;;  %v3440_v16 = vpop.eup %3439  ;;  %v863_v18 = vmul.f32 %v3438_v14, %v3436_v55 }
 0x4a3   :  { %1137 = vmax.xlane.f32.xlu1 %v1136_v11  ;;  %v1133_v15 = vsel %vm267_vm3, %v1125_v9, -inf  ;;  %v865_v19 = vmul.f32 %v3440_v16, %v3434_v52 }
 0x4a4   :  { %1134 = vmax.xlane.f32.xlu0 %v1133_v15 }
 0x4a7   :  { %3034 = vmatmul.mubr.msk.f32.vlgmr.msra.gmra.mrb[4].mxu0 %vm183_vm1, %v3011_v60 }
 0x4a8   :  { %3209 = vmatpush3.bf16.msra.mxu0 %v3206_v4  ;;  %3047 = vmatprep.mubr.msk.f32.mxu0 %vm267_vm3, %v863_v18  ;;  %v1242_v4 = vld [vmem:[#allocation5 + $0x10] sm:$0xf0] }
 0x4a9   :  { %v1244_v5 = vrot.slane %v1242_v4, 4 }
 0x4ab   :  { %3048 = vmatmul.mubr.msk.f32.vlgmr.msra.gmra.mrb[6].mxu0 %vm267_vm3, %v865_v19 }
 0x4b4   :  { %955 = vrot.lane.b32.xlu1 %v953_v20, %s3626_s21 }
 0x4b8   :  { %3373 = vrot.lane.b32.xlu1 %v3739_v13, %s3630_s25 }
 0x4bc   :  { %1621 = vrot.lane.b32.xlu1 %v3732_v12, %s3631_s26 }
 0x530   :  { %v1138_v21 = vpop.xlane.xlu1 %1137 }
 0x531   :  { %v1140_v22 = vsub.f32 %v1130_v7, %v1138_v21  ;;  %v1135_v23 = vpop.xlane.xlu0 %1134 }
 0x532   :  { %v1139_v24 = vsub.f32 %v1125_v9, %v1135_v23 }
 0x533   :  { %v1143_v25 = vmul.f32 1.442695, %v1140_v22 }
 0x534   :  { %v1141_v26 = vmul.f32 1.442695, %v1139_v24  ;;  %v956_v27 = vpop.permute.xlu1 %955 }
 0x535   :  { %3441 = vpow2.f32 %v1143_v25  ;;  %3050 = vmatprep.subr.msk.mxu0 %vm589_vm4, %v956_v27 }
 0x536   :  { %3051 = vmatpush3.msk.msra.mxu0 %vm589_vm4, %v956_v27  ;;  %3443 = vpow2.f32 %v1141_v26 }
 0x538   :  { %v3374_v28 = vpop.permute.xlu1 %3373 }
 0x539   :  { %v3376_v29 = vunpack.i.h.bf16 %v3374_v28  ;;  %v3375_v30 = vunpack.i.l.bf16 %v3374_v28 }
 0x53b   :  { %v3230_v33 = vpack.c.bf16 %v3376_v29, %v3375_v30 }
 0x53c   :  { %v1622_v34 = vpop.permute.xlu1 %1621 }
 0x53d   :  { %3232 = vmatprep.subr.msk.bf16.mxu1 %vm3749_vm2, %v3230_v33  ;;  %3097 = vmatprep.mubr.msk.f32.mxu1 %vm183_vm1, %v1622_v34 }
 0x53e   :  { %3235 = vmatpush3.bf16.xpose.msk.msra.mxu1 %vm3749_vm2, %v3230_v33 }
 0x53f   :  { %v3442_v35 = vpop.eup %3441 }
 0x540   :  { %v1148_v36 = vsel %vm267_vm3, %v3442_v35, 0.0  ;;  %v3444_v37 = vpop.eup %3443 }
 0x541   :  { %1149 = vadd.xlane.f32.xlu0 %v1148_v36  ;;  %v1145_v38 = vsel %vm267_vm3, %v3444_v37, 0.0 }
 0x545   :  { %1146 = vadd.xlane.f32.xlu0 %v1145_v38 }
 0x55b   :  { %3368 = vrot.lane.b32.xlu0 %v3739_v13, %s3632_s0 }
 0x55f   :  { %1623 = vrot.lane.b32.xlu0 %v3730_v10, %s3631_s26 }
 0x574   :  { %v3080_v39 = vpop.f32.mrb[10].mxu1 }
 0x575   :  { %v1414_v40 = vpop.f32.mrb[11].mxu1  ;;  %v1420_v43 = vadd.f32 %v3080_v39, %v3771_v31 }
 0x576   :  { %v1415_v41 = vadd.f32 %v1414_v40, %v3773_v32 }
 0x577   :  { %v1426_v44 = vsel %vm267_vm3, %v1420_v43, -inf }
 0x578   :  { %v1423_v42 = vsel %vm267_vm3, %v1415_v41, -inf }
 0x579   :  { %1424 = vmax.xlane.f32.xlu1 %v1423_v42 }
 0x57e   :  { %1427 = vmax.xlane.f32.xlu0 %v1426_v44  ;;  %v3049_v45 = vpop.f32.mrb[6].mxu0 }
 0x57f   :  { %v944_v46 = vpop.f32.mrb[7].mxu0 }
 0x580   :  { %3052 = vmatprep.mubr.msk.f32.mxu0 %vm183_vm1, %v944_v46 }
 0x581   :  { %3053 = vmatmul.mubr.msk.f32.vlgmr.msra.gmra.mrb[4].mxu0 %vm183_vm1, %v3049_v45 }
 0x5ce   :  { %v1150_v47 = vpop.xlane.xlu0 %1149 }
 0x5cf   :  { %3445 = vrcp.f32 %v1150_v47 }
 0x5d2   :  { %v1147_v48 = vpop.xlane.xlu0 %1146 }
 0x5d3   :  { %3447 = vrcp.f32 %v1147_v48 }
 0x5d6   :  { %v3369_v49 = vpop.permute.xlu0 %3368 }
 0x5d7   :  { %v3371_v50 = vunpack.i.h.bf16 %v3369_v49  ;;  %v3370_v51 = vunpack.i.l.bf16 %v3369_v49 }
 0x5d9   :  { %v3216_v52 = vpack.c.bf16 %v3371_v50, %v3370_v51  ;;  %v3446_v54 = vpop.eup %3445 }
 0x5da   :  { %v1624_v53 = vpop.permute.xlu0 %1623  ;;  %v1154_v57 = vmul.f32 %v3446_v54, %v3442_v35 }
 0x5db   :  { %3217 = vmatprep.subr.bf16.mxu0 %v3216_v52  ;;  %3098 = vmatmul.mubr.msk.f32.vlgmr.msra.gmra.mrb[12].mxu1 %vm183_vm1, %v1624_v53 }
 0x5dc   :  { %3219 = vmatpush3.bf16.msra.mxu0 %v3216_v52 }
 0x5dd   :  { %v3448_v55 = vpop.eup %3447 }
 0x5de   :  { %v1152_v56 = vmul.f32 %v3448_v55, %v3444_v37  ;;  %v1532_v37 = vld [vmem:[#allocation5 + $0x20] sm:$0xf] }
 0x5e0   :  { %3066 = vmatprep.mubr.msk.f32.mxu0 %vm267_vm3, %v1152_v56 }
 0x5e1   :  { %3067 = vmatmul.mubr.msk.f32.vlgmr.msra.gmra.mrb[8].mxu0 %vm267_vm3, %v1154_v57 }
 0x606   :  { %v1425_v58 = vpop.xlane.xlu1 %1424 }
 0x607   :  { %v1429_v59 = vsub.f32 %v1415_v41, %v1425_v58 }
 0x609   :  { %v1431_v60 = vmul.f32 1.442695, %v1429_v59 }
 0x60b   :  { %3449 = vpow2.f32 %v1431_v60  ;;  %v1428_v61 = vpop.xlane.xlu0 %1427 }
 0x60c   :  { %v1430_v62 = vsub.f32 %v1420_v43, %v1428_v61 }
 0x60e   :  { %v1433_v63 = vmul.f32 1.442695, %v1430_v62 }
 0x610   :  { %3451 = vpow2.f32 %v1433_v63 }
 0x615   :  { %v3450_v0 = vpop.eup %3449 }
 0x616   :  { %v1435_v1 = vsel %vm267_vm3, %v3450_v0, 0.0 }
 0x617   :  { %1436 = vadd.xlane.f32.xlu0 %v1435_v1 }
 0x61a   :  { %v3452_v2 = vpop.eup %3451 }
 0x61b   :  { %v1438_v3 = vsel %vm267_vm3, %v3452_v2, 0.0 }
 0x61c   :  { %1439 = vadd.xlane.f32.xlu1 %v1438_v3 }
 0x62d   :  { %1245 = vrot.lane.b32.xlu0 %v1244_v5, %s3626_s21  ;;  %3378 = vrot.lane.b32.xlu1 %v3739_v13, %s3633_s27 }
 0x631   :  { %1911 = vrot.lane.b32.xlu0 %v3732_v12, %s3634_s28  ;;  %3383 = vrot.lane.b32.xlu1 %v3739_v13, %s3635_s29 }
 0x635   :  { %1913 = vrot.lane.b32.xlu1 %v3730_v10, %s3634_s28 }
 0x6a4   :  { %v1437_v6 = vpop.xlane.xlu0 %1436 }
 0x6a5   :  { %3453 = vrcp.f32 %v1437_v6 }
 0x6a8   :  { %v1246_v7 = vpop.permute.xlu0 %1245 }
 0x6a9   :  { %v1440_v8 = vpop.xlane.xlu1 %1439  ;;  %3069 = vmatprep.subr.msk.mxu0 %vm589_vm4, %v1246_v7 }
 0x6aa   :  { %3070 = vmatpush3.msk.msra.mxu0 %vm589_vm4, %v1246_v7  ;;  %3455 = vrcp.f32 %v1440_v8 }
 0x6ac   :  { %v1912_v9 = vpop.permute.xlu0 %1911 }
 0x6ad   :  { %3116 = vmatprep.mubr.msk.f32.mxu1 %vm183_vm1, %v1912_v9  ;;  %v3379_v11 = vpop.permute.xlu1 %3378 }
 0x6ae   :  { %v3381_v14 = vunpack.i.h.bf16 %v3379_v11  ;;  %v3380_v15 = vunpack.i.l.bf16 %v3379_v11  ;;  %v3099_v16 = vpop.f32.mrb[12].mxu1 }
 0x6af   :  { %v1709_v18 = vadd.f32 %v3099_v16, %v3771_v31  ;;  %v1703_v19 = vpop.f32.mrb[13].mxu1  ;;  %v3454_v27 = vpop.eup %3453 }
 0x6b0   :  { %v3226_v20 = vpack.c.bf16 %v3381_v14, %v3380_v15  ;;  %v1704_v21 = vadd.f32 %v1703_v19, %v3773_v32  ;;  %v1442_v34 = vmul.f32 %v3454_v27, %v3450_v0 }
 0x6b1   :  { %v3384_v22 = vpop.permute.xlu1 %3383  ;;  %v1715_v23 = vsel %vm267_vm3, %v1709_v18, -inf }
 0x6b2   :  { %v3386_v24 = vunpack.i.h.bf16 %v3384_v22  ;;  %v3385_v25 = vunpack.i.l.bf16 %v3384_v22  ;;  %1716 = vmax.xlane.f32.xlu1 %v1715_v23  ;;  %3227 = vmatprep.subr.bf16.mxu0 %v3226_v20  ;;  %v1712_v26 = vsel %vm267_vm3, %v1704_v21, -inf }
 0x6b3   :  { %1713 = vmax.xlane.f32.xlu0 %v1712_v26 }
 0x6b4   :  { %v3240_v28 = vpack.c.bf16 %v3386_v24, %v3385_v25  ;;  %v3068_v29 = vpop.f32.mrb[8].mxu0  ;;  %v3456_v33 = vpop.eup %3455 }
 0x6b5   :  { %v1233_v30 = vpop.f32.mrb[9].mxu0  ;;  %v1444_v35 = vmul.f32 %v3456_v33, %v3452_v2  ;;  %v1914_v36 = vpop.permute.xlu1 %1913 }
 0x6b6   :  { %3071 = vmatprep.mubr.msk.f32.mxu0 %vm183_vm1, %v1233_v30  ;;  %3242 = vmatprep.subr.msk.bf16.mxu1 %vm3749_vm2, %v3240_v28 }
 0x6b7   :  { %3072 = vmatmul.mubr.msk.f32.vlgmr.msra.gmra.mrb[4].mxu0 %vm183_vm1, %v3068_v29  ;;  %3245 = vmatpush3.bf16.xpose.msk.msra.mxu1 %vm3749_vm2, %v3240_v28 }
 0x6b8   :  { %3229 = vmatpush3.bf16.msra.mxu0 %v3226_v20  ;;  %3085 = vmatprep.mubr.msk.f32.mxu0 %vm267_vm3, %v1442_v34  ;;  %v1821_v20 = vld [vmem:[#allocation5 + $0x20] sm:$0xf0] }
 0x6bb   :  { %3086 = vmatmul.mubr.msk.f32.vlgmr.msra.gmra.mrb[10].mxu0 %vm267_vm3, %v1444_v35 }
 0x6be   :  { %3117 = vmatmul.mubr.msk.f32.vlgmr.msra.gmra.mrb[14].mxu1 %vm183_vm1, %v1914_v36 }
 0x6c3   :  { %1534 = vrot.lane.b32.xlu1 %v1532_v37, %s3626_s21 }
 0x6c7   :  { %3393 = vrot.lane.b32.xlu1 %v3739_v13, %s3636_s30 }
 0x6cb   :  { %2200 = vrot.lane.b32.xlu1 %v3732_v12, %s3637_s5 }
 0x73f   :  { %v1717_v38 = vpop.xlane.xlu1 %1716 }
 0x740   :  { %v1719_v39 = vsub.f32 %v1709_v18, %v1717_v38  ;;  %v1714_v40 = vpop.xlane.xlu0 %1713 }
 0x741   :  { %v1718_v41 = vsub.f32 %v1704_v21, %v1714_v40  ;;  %v1823_v21 = vrot.slane %v1821_v20, 4 }
 0x742   :  { %v1722_v42 = vmul.f32 1.442695, %v1719_v39 }
 0x743   :  { %v1720_v43 = vmul.f32 1.442695, %v1718_v41  ;;  %v1535_v44 = vpop.permute.xlu1 %1534 }
 0x744   :  { %3457 = vpow2.f32 %v1722_v42  ;;  %3088 = vmatprep.subr.msk.mxu0 %vm589_vm4, %v1535_v44 }
 0x745   :  { %3089 = vmatpush3.msk.msra.mxu0 %vm589_vm4, %v1535_v44  ;;  %3459 = vpow2.f32 %v1720_v43 }
 0x747   :  { %v3394_v45 = vpop.permute.xlu1 %3393 }
 0x748   :  { %v3396_v46 = vunpack.i.h.bf16 %v3394_v45  ;;  %v3395_v47 = vunpack.i.l.bf16 %v3394_v45 }
 0x74a   :  { %v3250_v48 = vpack.c.bf16 %v3396_v46, %v3395_v47 }
 0x74b   :  { %v2201_v49 = vpop.permute.xlu1 %2200 }
 0x74c   :  { %3252 = vmatprep.subr.msk.bf16.mxu1 %vm3749_vm2, %v3250_v48  ;;  %3135 = vmatprep.mubr.msk.f32.mxu1 %vm183_vm1, %v2201_v49 }
 0x74d   :  { %3255 = vmatpush3.bf16.xpose.msk.msra.mxu1 %vm3749_vm2, %v3250_v48 }
 0x74e   :  { %v3458_v12 = vpop.eup %3457 }
 0x74f   :  { %v1727_v50 = vsel %vm267_vm3, %v3458_v12, 0.0  ;;  %v3460_v51 = vpop.eup %3459 }
 0x750   :  { %1728 = vadd.xlane.f32.xlu0 %v1727_v50  ;;  %v1724_v52 = vsel %vm267_vm3, %v3460_v51, 0.0  ;;  %v2111_v50 = vld [vmem:[#allocation5 + $0x30] sm:$0xf] }
 0x754   :  { %1725 = vadd.xlane.f32.xlu0 %v1724_v52 }
 0x76a   :  { %3388 = vrot.lane.b32.xlu0 %v3739_v13, %s3638_s6 }
 0x76e   :  { %2202 = vrot.lane.b32.xlu0 %v3730_v10, %s3637_s5 }
 0x78e   :  { %v3087_v53 = vpop.f32.mrb[10].mxu0 }
 0x78f   :  { %v1523_v54 = vpop.f32.mrb[11].mxu0 }
 0x790   :  { %3090 = vmatprep.mubr.msk.f32.mxu0 %vm183_vm1, %v1523_v54 }
 0x791   :  { %3091 = vmatmul.mubr.msk.f32.vlgmr.msra.gmra.mrb[4].mxu0 %vm183_vm1, %v3087_v53  ;;  %v3118_v17 = vpop.f32.mrb[14].mxu1 }
 0x792   :  { %v1999_v55 = vadd.f32 %v3118_v17, %v3771_v31  ;;  %v1993_v56 = vpop.f32.mrb[15].mxu1 }
 0x793   :  { %v1994_v57 = vadd.f32 %v1993_v56, %v3773_v32 }
 0x794   :  { %v2005_v58 = vsel %vm267_vm3, %v1999_v55, -inf }
 0x795   :  { %2006 = vmax.xlane.f32.xlu0 %v2005_v58  ;;  %v2002_v59 = vsel %vm267_vm3, %v1994_v57, -inf }
 0x796   :  { %2003 = vmax.xlane.f32.xlu1 %v2002_v59 }
 0x7dd   :  { %v1729_v60 = vpop.xlane.xlu0 %1728 }
 0x7de   :  { %3461 = vrcp.f32 %v1729_v60 }
 0x7e1   :  { %v1726_v10 = vpop.xlane.xlu0 %1725 }
 0x7e2   :  { %3463 = vrcp.f32 %v1726_v10 }
 0x7e5   :  { %v3389_v61 = vpop.permute.xlu0 %3388 }
 0x7e6   :  { %v3391_v62 = vunpack.i.h.bf16 %v3389_v61  ;;  %v3390_v63 = vunpack.i.l.bf16 %v3389_v61 }
 0x7e8   :  { %v3236_v0 = vpack.c.bf16 %v3391_v62, %v3390_v63  ;;  %v3462_v2 = vpop.eup %3461 }
 0x7e9   :  { %v2203_v1 = vpop.permute.xlu0 %2202  ;;  %v1733_v5 = vmul.f32 %v3462_v2, %v3458_v12  ;;  %v2866_v2 = vld [vmem:[#allocation7 + $0x1] ss:$0 sm:$0xff] }
 0x7ea   :  { %3237 = vmatprep.subr.bf16.mxu0 %v3236_v0  ;;  %3136 = vmatmul.mubr.msk.f32.vlgmr.msra.gmra.mrb[16].mxu1 %vm183_vm1, %v2203_v1 }
 0x7eb   :  { %3239 = vmatpush3.bf16.msra.mxu0 %v3236_v0 }
 0x7ec   :  { %v3464_v3 = vpop.eup %3463 }
 0x7ed   :  { %v1731_v4 = vmul.f32 %v3464_v3, %v3460_v51  ;;  %v2400_v51 = vld [vmem:[#allocation5 + $0x30] sm:$0xf0] }
 0x7ee   :  { %v2402_v52 = vrot.slane %v2400_v51, 4 }
 0x7ef   :  { %3104 = vmatprep.mubr.msk.f32.mxu0 %vm267_vm3, %v1731_v4 }
 0x7f0   :  { %3105 = vmatmul.mubr.msk.f32.vlgmr.msra.gmra.mrb[12].mxu0 %vm267_vm3, %v1733_v5 }
 0x822   :  { %v2007_v6 = vpop.xlane.xlu0 %2006 }
 0x823   :  { %v2009_v7 = vsub.f32 %v1999_v55, %v2007_v6  ;;  %v2004_v8 = vpop.xlane.xlu1 %2003 }
 0x824   :  { %v2008_v9 = vsub.f32 %v1994_v57, %v2004_v8 }
 0x825   :  { %v2012_v11 = vmul.f32 1.442695, %v2009_v7  ;;  %v3489_v7 = vld [vmem:[#allocation2 + $0x8] sm:$0xff] }
 0x826   :  { %v2010_v14 = vmul.f32 1.442695, %v2008_v9  ;;  %v3490_v9 = vld [vmem:[#allocation2] sm:$0xff] }
 0x827   :  { %3465 = vpow2.f32 %v2012_v11 }
 0x828   :  { %3467 = vpow2.f32 %v2010_v14 }
 0x831   :  { %v3466_v15 = vpop.eup %3465 }
 0x832   :  { %v3468_v16 = vpop.eup %3467  ;;  %v2017_v18 = vsel %vm267_vm3, %v3466_v15, 0.0 }
 0x833   :  { %2018 = vadd.xlane.f32.xlu1 %v2017_v18  ;;  %v2014_v19 = vsel %vm267_vm3, %v3468_v16, 0.0 }
 0x834   :  { %2015 = vadd.xlane.f32.xlu0 %v2014_v19 }
 0x844   :  { %3398 = vrot.lane.b32.xlu1 %v3739_v13, %s3639_s7 }
 0x84a   :  { %1824 = vrot.lane.b32.xlu0 %v1823_v21, %s3626_s21 }
 0x8bd   :  { %v3137_v22 = vpop.f32.mrb[16].mxu1 }
 0x8be   :  { %v2288_v23 = vadd.f32 %v3137_v22, %v3771_v31  ;;  %v2282_v24 = vpop.f32.mrb[17].mxu1 }
 0x8bf   :  { %v2283_v25 = vadd.f32 %v2282_v24, %v3773_v32 }
 0x8c0   :  { %v2019_v26 = vpop.xlane.xlu1 %2018  ;;  %v2294_v27 = vsel %vm267_vm3, %v2288_v23, -inf }
 0x8c1   :  { %3469 = vrcp.f32 %v2019_v26  ;;  %2295 = vmax.xlane.f32.xlu0 %v2294_v27  ;;  %v2016_v28 = vpop.xlane.xlu0 %2015  ;;  %v2291_v29 = vsel %vm267_vm3, %v2283_v25, -inf  ;;  %v85_v27 = vld [vmem:[#allocation5 + $0x8] sm:$0xff] }
 0x8c2   :  { %3471 = vrcp.f32 %v2016_v28  ;;  %2292 = vmax.xlane.f32.xlu1 %v2291_v29  ;;  %v86_v28 = vld [vmem:[#allocation5 + $0x18] sm:$0xff] }
 0x8c3   :  { %v3106_v30 = vpop.f32.mrb[12].mxu0  ;;  %v3260_v29 = vpack.c.bf16 %v86_v28, %v85_v27 }
 0x8c4   :  { %v3399_v33 = vpop.permute.xlu1 %3398  ;;  %v1812_v34 = vpop.f32.mrb[13].mxu0 }
 0x8c5   :  { %v3401_v35 = vunpack.i.h.bf16 %v3399_v33  ;;  %v3400_v36 = vunpack.i.l.bf16 %v3399_v33  ;;  %v1825_v37 = vpop.permute.xlu0 %1824  ;;  %3109 = vmatprep.mubr.msk.f32.mxu0 %vm183_vm1, %v1812_v34  ;;  %v88_v33 = vld [vmem:[#allocation5 + $0x38] sm:$0xff]  ;;  %3261 = vmatprep.subr.bf16.mxu1 %v3260_v29 }
 0x8c6   :  { %3107 = vmatprep.subr.msk.mxu0 %vm589_vm4, %v1825_v37  ;;  %3263 = vmatpush3.bf16.msra.mxu1 %v3260_v29 }
 0x8c7   :  { %v3246_v31 = vpack.c.bf16 %v3401_v35, %v3400_v36  ;;  %3108 = vmatpush3.msk.msra.mxu0 %vm589_vm4, %v1825_v37  ;;  %v3407_v35 = vpack.i.bf16 %v86_v28, %v85_v27  ;;  %v2879_v28 = vld [vmem:[#allocation7 + $0x6] ss:$0 sm:$0xff] }
 0x8c8   :  { %3110 = vmatmul.mubr.msk.f32.vlgmr.msra.gmra.mrb[4].mxu0 %vm183_vm1, %v3106_v30  ;;  %v87_v30 = vld [vmem:[#allocation5 + $0x28] sm:$0xff] }
 0x8c9   :  { %3247 = vmatprep.subr.bf16.mxu0 %v3246_v31  ;;  %v3264_v34 = vpack.c.bf16 %v88_v33, %v87_v30  ;;  %v3412_v36 = vpack.i.bf16 %v88_v33, %v87_v30 }
 0x8ca   :  { %3249 = vmatpush3.bf16.msra.mxu0 %v3246_v31 }
 0x8cb   :  { %v3470_v32 = vpop.eup %3469  ;;  %3265 = vmatprep.subr.bf16.mxu1 %v3264_v34 }
 0x8cc   :  { %v3472_v38 = vpop.eup %3471  ;;  %v2023_v40 = vmul.f32 %v3470_v32, %v3466_v15  ;;  %3267 = vmatpush3.bf16.msra.mxu1 %v3264_v34  ;;  %v2880_v34 = vld [vmem:[#allocation7 + $0x7] ss:$0 sm:$0xff] }
 0x8cd   :  { %v2021_v39 = vmul.f32 %v3472_v38, %v3468_v16 }
 0x8cf   :  { %3123 = vmatprep.mubr.msk.f32.mxu0 %vm267_vm3, %v2021_v39 }
 0x8d0   :  { %3124 = vmatmul.mubr.msk.f32.vlgmr.msra.gmra.mrb[14].mxu0 %vm267_vm3, %v2023_v40 }
 0x94e   :  { %v2296_v41 = vpop.xlane.xlu0 %2295 }
 0x94f   :  { %v2298_v42 = vsub.f32 %v2288_v23, %v2296_v41  ;;  %v2293_v43 = vpop.xlane.xlu1 %2292 }
 0x950   :  { %v2297_v44 = vsub.f32 %v2283_v25, %v2293_v43 }
 0x951   :  { %v2301_v45 = vmul.f32 1.442695, %v2298_v42 }
 0x952   :  { %v2299_v46 = vmul.f32 1.442695, %v2297_v44  ;;  %v2867_v44 = vld [vmem:[#allocation7 + $0x4] ss:$0 sm:$0xff] }
 0x953   :  { %3473 = vpow2.f32 %v2301_v45 }
 0x954   :  { %3475 = vpow2.f32 %v2299_v46 }
 0x95d   :  { %v3474_v47 = vpop.eup %3473 }
 0x95e   :  { %v3476_v48 = vpop.eup %3475  ;;  %v2306_v49 = vsel %vm267_vm3, %v3474_v47, 0.0 }
 0x95f   :  { %2307 = vadd.xlane.f32.xlu1 %v2306_v49  ;;  %v2303_v12 = vsel %vm267_vm3, %v3476_v48, 0.0 }
 0x960   :  { %2304 = vadd.xlane.f32.xlu0 %v2303_v12  ;;  %v2868_v12 = vld [vmem:[#allocation7 + $0x5] ss:$0 sm:$0xff] }
 0x970   :  { %3403 = vrot.lane.b32.xlu1 %v3739_v13, %s3640_s8 }
 0x974   :  { %2403 = vrot.lane.b32.xlu1 %v2402_v52, %s3626_s21 }
 0x976   :  { %2113 = vrot.lane.b32.xlu0 %v2111_v50, %s3626_s21 }
 0x9a3   :  { %v3125_v53 = vpop.f32.mrb[14].mxu0 }
 0x9a4   :  { %v2102_v54 = vpop.f32.mrb[15].mxu0 }
 0x9a5   :  { %3128 = vmatprep.mubr.msk.f32.mxu0 %vm183_vm1, %v2102_v54 }
 0x9ec   :  { %v2308_v17 = vpop.xlane.xlu1 %2307 }
 0x9ed   :  { %3477 = vrcp.f32 %v2308_v17  ;;  %v2305_v55 = vpop.xlane.xlu0 %2304 }
 0x9ee   :  { %3479 = vrcp.f32 %v2305_v55 }
 0x9f0   :  { %v3404_v56 = vpop.permute.xlu1 %3403 }
 0x9f1   :  { %v3406_v57 = vunpack.i.h.bf16 %v3404_v56  ;;  %v3405_v58 = vunpack.i.l.bf16 %v3404_v56  ;;  %v2114_v59 = vpop.permute.xlu0 %2113 }
 0x9f2   :  { %3126 = vmatprep.subr.msk.mxu0 %vm589_vm4, %v2114_v59 }
 0x9f3   :  { %v3256_v13 = vpack.c.bf16 %v3406_v57, %v3405_v58  ;;  %3127 = vmatpush3.msk.msra.mxu0 %vm589_vm4, %v2114_v59  ;;  %v2869_v57 = vld [vmem:[#allocation7 + $0x2] ss:$0 sm:$0xff] }
 0x9f4   :  { %3129 = vmatmul.mubr.msk.f32.vlgmr.msra.gmra.mrb[4].mxu0 %vm183_vm1, %v3125_v53  ;;  %v2404_v60 = vpop.permute.xlu1 %2403 }
 0x9f5   :  { %3257 = vmatprep.subr.bf16.mxu0 %v3256_v13 }
 0x9f6   :  { %3259 = vmatpush3.bf16.msra.mxu0 %v3256_v13 }
 0x9f7   :  { %v3478_v10 = vpop.eup %3477  ;;  %3145 = vmatprep.subr.msk.mxu0 %vm589_vm4, %v2404_v60 }
 0x9f8   :  { %v3480_v61 = vpop.eup %3479  ;;  %v2312_v63 = vmul.f32 %v3478_v10, %v3474_v47 }
 0x9f9   :  { %v2310_v62 = vmul.f32 %v3480_v61, %v3476_v48 }
 0x9fb   :  { %3142 = vmatprep.mubr.msk.f32.mxu0 %vm267_vm3, %v2310_v62  ;;  %v2872_v62 = vld [vmem:[#allocation7 + $0x3] ss:$0 sm:$0xff] }
 0x9fc   :  { %3143 = vmatmul.mubr.msk.f32.vlgmr.msra.gmra.mrb[16].mxu0 %vm267_vm3, %v2312_v63 }
 0x9fd   :  { %3146 = vmatpush3.msk.msra.mxu0 %vm589_vm4, %v2404_v60 }
 0xacf   :  { %v3144_v0 = vpop.f32.mrb[16].mxu0 }
 0xad0   :  { %v2391_v1 = vpop.f32.mrb[17].mxu0 }
 0xad1   :  { %3147 = vmatprep.mubr.msk.f32.mxu0 %vm183_vm1, %v2391_v1 }
 0xad2   :  { %3148 = vmatmul.mubr.msk.f32.vlgmr.msra.gmra.mrb[4].mxu0 %vm183_vm1, %v3144_v0 }
 0xba5   :  { %v3149_v3 = vpop.f32.mrb[4].mxu0 }
 0xba6   :  { %v2495_v4 = vadd.f32 %v3149_v3, %v2866_v2  ;;  %v2479_v5 = vpop.f32.mrb[5].mxu0 }
 0xba7   :  { %v2494_v6 = vadd.f32 %v2866_v2, %v2479_v5 }
 0xba8   :  { %v2497_v8 = vadd.f32 %v3489_v7, %v2495_v4 }
 0xba9   :  { %v2496_v11 = vadd.f32 %v3490_v9, %v2494_v6 }
 0xbaa   :  { %v2501_v14 = vsel %vm93_vm0, %v2497_v8, 0.0 }
 0xbab   :  { %2502 = vadd.xlane.f32.xlu1 %v2501_v14  ;;  %v2498_v15 = vsel %vm93_vm0, %v2496_v11, 0.0 }
 0xbac   :  { %2499 = vadd.xlane.f32.xlu0 %v2498_v15 }
 0xbbc   :  { %3408 = vrot.lane.b32.xlu1 %v3407_v35, %s3624_s19 }
 0xc38   :  { %v2503_v16 = vpop.xlane.xlu1 %2502 }
 0xc39   :  { %v2506_v18 = vmul.f32 0.03125, %v2503_v16  ;;  %v2500_v19 = vpop.xlane.xlu0 %2499 }
 0xc3a   :  { %v2505_v20 = vmul.f32 0.03125, %v2500_v19 }
 0xc3b   :  { %v2508_v21 = vsub.f32 %v2497_v8, %v2506_v18 }
 0xc3c   :  { %v2507_v22 = vsub.f32 %v2496_v11, %v2505_v20  ;;  %v3409_v41 = vpop.permute.xlu1 %3408 }
 0xc3d   :  { %v2510_v25 = vmul.f32 %v2508_v21, %v2508_v21  ;;  %v3411_v45 = vunpack.i.h.bf16 %v3409_v41  ;;  %v3410_v46 = vunpack.i.l.bf16 %v3409_v41 }
 0xc3e   :  { %v2509_v23 = vmul.f32 %v2507_v22, %v2507_v22 }
 0xc3f   :  { %v2514_v26 = vsel %vm93_vm0, %v2510_v25, 0.0  ;;  %v3268_v50 = vpack.c.bf16 %v3411_v45, %v3410_v46 }
 0xc40   :  { %v2511_v24 = vsel %vm93_vm0, %v2509_v23, 0.0 }
 0xc41   :  { %2512 = vadd.xlane.f32.xlu0 %v2511_v24  ;;  %3270 = vmatprep.subr.msk.bf16.mxu0 %vm3269_vm6, %v3268_v50 }
 0xc42   :  { %3273 = vmatpush3.bf16.xpose.msk.msra.mxu0 %vm3269_vm6, %v3268_v50 }
 0xc45   :  { %2515 = vadd.xlane.f32.xlu0 %v2514_v26 }
 0xc5b   :  { %3413 = vrot.lane.b32.xlu0 %v3412_v36, %s3624_s19 }
 0xcce   :  { %v2513_v37 = vpop.xlane.xlu0 %2512 }
 0xccf   :  { %v2517_v31 = vmul.f32 0.03125, %v2513_v37 }
 0xcd1   :  { %v2519_v32 = vadd.f32 1e-05, %v2517_v31 }
 0xcd2   :  { %v2516_v38 = vpop.xlane.xlu0 %2515 }
 0xcd3   :  { %3481 = vrsqrt.f32 %v2519_v32  ;;  %v2518_v39 = vmul.f32 0.03125, %v2516_v38 }
 0xcd5   :  { %v2520_v40 = vadd.f32 1e-05, %v2518_v39 }
 0xcd6   :  { %v3414_v42 = vpop.permute.xlu0 %3413 }
 0xcd7   :  { %3483 = vrsqrt.f32 %v2520_v40  ;;  %v3416_v47 = vunpack.i.h.bf16 %v3414_v42  ;;  %v3415_v48 = vunpack.i.l.bf16 %v3414_v42 }
 0xcd9   :  { %v3274_v51 = vpack.c.bf16 %v3416_v47, %v3415_v48 }
 0xcdb   :  { %3276 = vmatprep.subr.msk.bf16.mxu0 %vm3269_vm6, %v3274_v51 }
 0xcdc   :  { %3279 = vmatpush3.bf16.xpose.msk.msra.mxu0 %vm3269_vm6, %v3274_v51 }
 0xcdd   :  { %v3482_v43 = vpop.eup %3481 }
 0xcde   :  { %v2523_v49 = vmul.f32 %v3482_v43, %v2507_v22 }
 0xce0   :  { %v2529_v52 = vmul.f32 %v2867_v44, %v2523_v49 }
 0xce1   :  { %v3484_v53 = vpop.eup %3483 }
 0xce2   :  { %v2524_v54 = vmul.f32 %v3484_v53, %v2508_v21  ;;  %v2535_v17 = vadd.f32 %v2868_v12, %v2529_v52 }
 0xce4   :  { %v2530_v55 = vmul.f32 %v2867_v44, %v2524_v54  ;;  %3158 = vmatprep.mubr.msk.f32.mxu1 %vm93_vm0, %v2535_v17 }
 0xce6   :  { %v2536_v56 = vadd.f32 %v2868_v12, %v2530_v55 }
 0xce8   :  { %3159 = vmatmul.mubr.msk.f32.vlgmr.msra.gmra.mrb[18].mxu1 %vm93_vm0, %v2536_v56 }
 0xdbb   :  { %v3160_v58 = vpop.f32.mrb[18].mxu1 }
 0xdbc   :  { %v2619_v59 = vadd.f32 %v3160_v58, %v2869_v57  ;;  %v2613_v13 = vpop.f32.mrb[19].mxu1 }
 0xdbd   :  { %v2614_v60 = vadd.f32 %v2869_v57, %v2613_v13 }
 0xdbe   :  { %v2623_v61 = vmax.f32 %v2619_v59, 0.0 }
 0xdbf   :  { %v2622_v10 = vmax.f32 %v2614_v60, 0.0 }
 0xdc1   :  { %3169 = vmatprep.mubr.msk.f32.mxu0 %vm2640_vm5, %v2622_v10 }
 0xdc2   :  { %3170 = vmatmul.mubr.msk.f32.vlgmr.msra.gmra.mrb[18].mxu0 %vm2640_vm5, %v2623_v61 }
 0xe95   :  { %v3171_v63 = vpop.f32.mrb[18].mxu0 }
 0xe96   :  { %v2727_v0 = vadd.f32 %v3171_v63, %v2872_v62  ;;  %v2721_v1 = vpop.f32.mrb[19].mxu0 }
 0xe97   :  { %v2722_v2 = vadd.f32 %v2872_v62, %v2721_v1 }
 0xe98   :  { %v2731_v3 = vadd.f32 %v2727_v0, %v2536_v56 }
 0xe99   :  { %v2730_v4 = vadd.f32 %v2722_v2, %v2535_v17 }
 0xe9a   :  { %v2735_v5 = vsel %vm93_vm0, %v2731_v3, 0.0 }
 0xe9b   :  { %2736 = vadd.xlane.f32.xlu0 %v2735_v5  ;;  %v2732_v6 = vsel %vm93_vm0, %v2730_v4, 0.0 }
 0xe9c   :  { %2733 = vadd.xlane.f32.xlu1 %v2732_v6 }
 0xf28   :  { %v2737_v7 = vpop.xlane.xlu0 %2736 }
 0xf29   :  { %v2739_v8 = vmul.f32 0.03125, %v2737_v7  ;;  %v2734_v9 = vpop.xlane.xlu1 %2733 }
 0xf2a   :  { %v2738_v11 = vmul.f32 0.03125, %v2734_v9 }
 0xf2b   :  { %v2741_v14 = vsub.f32 %v2731_v3, %v2739_v8 }
 0xf2c   :  { %v2740_v15 = vsub.f32 %v2730_v4, %v2738_v11 }
 0xf2d   :  { %v2743_v16 = vmul.f32 %v2741_v14, %v2741_v14 }
 0xf2e   :  { %v2742_v18 = vmul.f32 %v2740_v15, %v2740_v15 }
 0xf2f   :  { %v2747_v19 = vsel %vm93_vm0, %v2743_v16, 0.0 }
 0xf30   :  { %2748 = vadd.xlane.f32.xlu0 %v2747_v19  ;;  %v2744_v20 = vsel %vm93_vm0, %v2742_v18, 0.0 }
 0xf31   :  { %2745 = vadd.xlane.f32.xlu1 %v2744_v20 }
 0xfbd   :  { %v2749_v21 = vpop.xlane.xlu0 %2748 }
 0xfbe   :  { %v2751_v22 = vmul.f32 0.03125, %v2749_v21  ;;  %v2746_v23 = vpop.xlane.xlu1 %2745 }
 0xfbf   :  { %v2750_v24 = vmul.f32 0.03125, %v2746_v23 }
 0xfc0   :  { %v2753_v25 = vadd.f32 1e-05, %v2751_v22 }
 0xfc1   :  { %v2752_v26 = vadd.f32 1e-05, %v2750_v24 }
 0xfc2   :  { %3485 = vrsqrt.f32 %v2753_v25 }
 0xfc3   :  { %3487 = vrsqrt.f32 %v2752_v26 }
 0xfcc   :  { %v3486_v27 = vpop.eup %3485 }
 0xfcd   :  { %v3488_v29 = vpop.eup %3487  ;;  %v2757_v30 = vmul.f32 %v3486_v27, %v2741_v14 }
 0xfce   :  { %v2756_v33 = vmul.f32 %v3488_v29, %v2740_v15 }
 0xfcf   :  { %v2763_v35 = vmul.f32 %v2879_v28, %v2757_v30 }
 0xfd0   :  { %v2762_v36 = vmul.f32 %v2879_v28, %v2756_v33 }
 0xfd1   :  { %v2769_v37 = vadd.f32 %v2880_v34, %v2763_v35 }
 0xfd2   :  { %v2768_v31 = vadd.f32 %v2880_v34, %v2762_v36 }
 0xfd3   :  { %2771 = vst.msk [vmem:[#allocation10 + $0x8] sm:$0xff] %vm93_vm0, %v2769_v37 }
 0xfd4   :  { %2770 = vst.msk [vmem:[#allocation10] sm:$0xff] %vm93_vm0, %v2768_v31 }
 0xfd5   :  { %3590 = shalt.err (!%p3587_p8)
}
 0xfd6   :  { %s3591_s12 = scalar_lea.hbm %s3984_s4, 256 }
 0xfd7   :  { %p3592_p9 = scmp.ne.s32.totalorder %s3984_s4, %s3591_s12  ;;  %p3595_p10 = scmp.lt.u32.totalorder %s3591_s12, %s3984_s4 }
 0xfd9   :  { %p3597_p11 = pnand %p3595_p10, %p3592_p9 }
 0xfdb   :  { %3600 = shalt.err (!%p3597_p11)
}
 0xfdc   :  { %2783 = dma.vmem_to_hbm [thread:$0]  %s2778_s10, 256, %s3984_s4, [#allocation4], %s3613_s1, %s3613_s1, %s3614_s13  }
 0xfdd   :  { %3607 = dma.done.wait [#allocation4], 256  }
 0xfde   :  { %3608 = vsyncadd [#allocation4], 4294967040 }
 0xfdf   :  { %2787 = vsyncpa [#allocation3], 1 }
 0xfe0   :  { %2788 = vsyncpa [#allocation6], 1 }
 0xfe1   :  { %2789 = vsyncpa [#allocation9], 1 }
 0xfe2   :  { %2790 = vsyncpa [#allocation4], 1 }

</bundles_post_ra>
